<compile_context>
chip_gen: v7x
topology: tpu7x:2x2x1
jax: 0.10.0
libtpu: 0.0.40
codegen_flags: <defaults>
</compile_context>

<pallas_src>
import math

import jax
import jax.numpy as jnp
from jax import lax
from jax.experimental import pallas as pl
from jax.experimental.pallas import tpu as pltpu


def _round_up(v, m):
    return ((v + m - 1) // m) * m


def strnn_kernel(maxlen_ref, pre_ref, whh_ref, lens_ref, out_ref, h_scr, c_scr):
    """One (batch-block, time-chunk) grid step of the LSTM recurrence.

    maxlen_ref: (1,) int32 in SMEM (scalar prefetch) -- max valid length.
    pre_ref   : (Tc, Bc, 4H) precomputed x @ W_ih + b, time-major.
    whh_ref   : (H, 4H) fused recurrent weights (same block across the grid).
    lens_ref  : (Bc, 1) int32 valid lengths.
    out_ref   : (Bc, H) hidden state at t == len-1 (written on last time chunk).
    h_scr/c_scr: (Bc, H) running LSTM state, persistent across time chunks.
    """
    Tc = pre_ref.shape[0]
    H = h_scr.shape[-1]

    c_idx = pl.program_id(1)          # time-chunk index (inner, "arbitrary")
    n_c = pl.num_programs(1)
    t0 = c_idx * Tc

    @pl.when(c_idx == 0)
    def _():
        h_scr[...] = jnp.zeros_like(h_scr)
        c_scr[...] = jnp.zeros_like(c_scr)

    # Skip time chunks that lie entirely beyond the longest valid sequence.
    @pl.when(t0 < maxlen_ref[0])
    def _():
        whh = whh_ref[...]            # (H, 4H)  loaded once per chunk
        lens = lens_ref[...]          # (Bc, 1)  int32

        def step(tt, carry):
            t = t0 + tt
            h = h_scr[...]
            c = c_scr[...]
            # Single fused (Bc, H) x (H, 4H) matmul per step.
            z = pre_ref[tt] + jnp.dot(h, whh, preferred_element_type=jnp.float32)
            i_g = jax.nn.sigmoid(z[:, 0 * H:1 * H])
            f_g = jax.nn.sigmoid(z[:, 1 * H:2 * H])
            g_g = jnp.tanh(z[:, 2 * H:3 * H])
            o_g = jax.nn.sigmoid(z[:, 3 * H:4 * H])
            c_new = f_g * c + i_g * g_g
            h_new = o_g * jnp.tanh(c_new)
            # Freeze each row's state once its sequence ended: final h is then
            # exactly the hidden state at timestep len-1 (no per-step masked
            # output store, padded rows with len=0 stay zero).
            active = t < lens                      # (Bc, 1) bool
            h_scr[...] = jnp.where(active, h_new, h)
            c_scr[...] = jnp.where(active, c_new, c)
            return carry

        lax.fori_loop(0, Tc, step, 0, unroll=True)

    @pl.when(c_idx == n_c - 1)
    def _():
        out_ref[...] = h_scr[...]


def strnn_forward(x, sq_lengths, wih, whh, b, *, time_chunk=16):
    """x: (B, T, D) float32, sq_lengths: (B,) int.
    wih: (4, D, H), whh: (4, H, H), b: (4, 1, H) = bias_ih + bias_hh,
    gate order (i, f, g, o) as in PyTorch.  Returns (B, H) float32."""
    B, T, D = x.shape
    H = whh.shape[-1]
    G = 4 * H

    # --- Fuse the four gates into single wide matrices (matmul N-dim = 4H). ---
    wih_f = jnp.concatenate([wih[g] for g in range(4)], axis=-1)    # (D, 4H)
    whh_f = jnp.concatenate([whh[g] for g in range(4)], axis=-1)    # (H, 4H)
    b_f = jnp.concatenate([b[g] for g in range(4)], axis=-1)        # (1, 4H)

    # --- Hoist the input projection out of the recurrence.  One big
    # throughput-bound matmul producing time-major pre-activations. ---
    pre = jnp.einsum("btd,dg->tbg", x.astype(jnp.float32), wih_f,
                     preferred_element_type=jnp.float32) + b_f       # (T, B, 4H)

    # --- Pad batch to a sublane multiple, time to a chunk multiple. ---
    Bc = min(128, _round_up(max(B, 1), 8))   # batch rows per block (sublane mult.)
    Bp = _round_up(max(B, 1), Bc)
    Tc = min(time_chunk, T)
    Tp = _round_up(T, Tc)
    pre = jnp.pad(pre, ((0, Tp - T), (0, Bp - B), (0, 0)))
    # Padded rows get length 0 -> their state never updates; sliced off below.
    lens = jnp.pad(sq_lengths.astype(jnp.int32), (0, Bp - B)).reshape(Bp, 1)
    max_len = jnp.max(sq_lengths).astype(jnp.int32).reshape(1)

    n_b = Bp // Bc
    n_c = Tp // Tc

    out_p = pl.pallas_call(
        strnn_kernel,
        out_shape=jax.ShapeDtypeStruct((Bp, H), jnp.float32),
        grid_spec=pltpu.PrefetchScalarGridSpec(
            num_scalar_prefetch=1,
            grid=(n_b, n_c),                 # (batch blocks, time chunks)
            in_specs=[
                pl.BlockSpec((Tc, Bc, G), lambda bi, ci, ml: (ci, bi, 0)),
                pl.BlockSpec((H, G), lambda bi, ci, ml: (0, 0)),
                pl.BlockSpec((Bc, 1), lambda bi, ci, ml: (bi, 0)),
            ],
            out_specs=pl.BlockSpec((Bc, H), lambda bi, ci, ml: (bi, 0)),
            scratch_shapes=[
                pltpu.VMEM((Bc, H), jnp.float32),    # h
                pltpu.VMEM((Bc, H), jnp.float32),    # c
            ],
        ),
        compiler_params=pltpu.CompilerParams(
            dimension_semantics=("parallel", "arbitrary"),
            vmem_limit_bytes=32 * 1024 * 1024,   # fits v5e/v6e/v7x scoped VMEM
        ),
    )(max_len, pre, whh_f, lens)

    return out_p[:B]


def lstm_reference(x, sq_lengths, wih, whh, b):
    """Pure-JAX reference for correctness checking."""
    B, T, D = x.shape
    H = whh.shape[-1]
    h = jnp.zeros((B, H), jnp.float32)
    c = jnp.zeros((B, H), jnp.float32)
    outs = []
    for t in range(T):
        xt = x[:, t, :]
        i_g = jax.nn.sigmoid(xt @ wih[0] + h @ whh[0] + b[0])
        f_g = jax.nn.sigmoid(xt @ wih[1] + h @ whh[1] + b[1])
        g_g = jnp.tanh(xt @ wih[2] + h @ whh[2] + b[2])
        o_g = jax.nn.sigmoid(xt @ wih[3] + h @ whh[3] + b[3])
        c = f_g * c + i_g * g_g
        h = o_g * jnp.tanh(c)
        outs.append(h)
    outs = jnp.stack(outs, axis=1)                       # (B, T, H)
    return outs[jnp.arange(B), sq_lengths - 1]           # (B, H)


if __name__ == "__main__":
    # Small shapes implied by the module: opts.stDim -> D, opts.srnnDim -> H.
    B, T, D, H = 2, 8, 4, 32

    key = jax.random.PRNGKey(0)
    k_x, k_wih, k_whh, k_bih, k_bhh = jax.random.split(key, 5)

    # PyTorch LSTM default init: U(-1/sqrt(H), 1/sqrt(H)).
    bound = 1.0 / math.sqrt(H)
    # weight_ih_l0: (4H, D) -> stacked per-gate (4, D, H); weight_hh_l0: (4H, H) -> (4, H, H)
    w_ih = jax.random.uniform(k_wih, (4, H, D), jnp.float32, -bound, bound)
    w_hh = jax.random.uniform(k_whh, (4, H, H), jnp.float32, -bound, bound)
    wih = jnp.transpose(w_ih, (0, 2, 1))                 # (4, D, H)
    whh = jnp.transpose(w_hh, (0, 2, 1))                 # (4, H, H)
    b_ih = jax.random.uniform(k_bih, (4, 1, H), jnp.float32, -bound, bound)
    b_hh = jax.random.uniform(k_bhh, (4, 1, H), jnp.float32, -bound, bound)
    b = b_ih + b_hh                                      # (4, 1, H)

    x = jax.random.normal(k_x, (B, T, D), jnp.float32)
    sq_lengths = jnp.array([5, 8], dtype=jnp.int32)      # per-batch valid lengths

    out = strnn_forward(x, sq_lengths, wih, whh, b)
    out = jax.block_until_ready(out)

    ref = lstm_reference(x, sq_lengths, wih, whh, b)
    assert out.shape == (B, H)
    assert jnp.allclose(out, ref, atol=1e-5, rtol=1e-5), "mismatch vs reference"

    print("KERNEL_OK")
</pallas_src>

<mosaic_0001>
module attributes {stable_mosaic.version = 11 : i64} {
  func.func @strnn_kernel(%arg0: i32, %arg1: i32, %arg2: memref<1xi32, #tpu.memory_space<smem>>, %arg3: memref<8x8x128xf32, #tpu.memory_space<vmem>>, %arg4: memref<32x128xf32, #tpu.memory_space<vmem>>, %arg5: memref<8x1xi32, #tpu.memory_space<vmem>>, %arg6: memref<8x32xf32, #tpu.memory_space<vmem>>, %arg7: memref<8x32xf32, #tpu.memory_space<vmem>>, %arg8: memref<8x32xf32, #tpu.memory_space<vmem>>) attributes {dimension_semantics = [#tpu.dimension_semantics<parallel>, #tpu.dimension_semantics<arbitrary>], iteration_bounds = array<i64: 1, 1>, scalar_prefetch = 1 : i64, scratch_operands = 2 : i64, tpu.core_type = #tpu.core_type<tc>, window_params = [{transform_indices = @transform_0, window_bounds = array<i64: 8, 8, 128>}, {pipeline_mode = #tpu.pipeline_mode<synchronous>, transform_indices = @transform_1, window_bounds = array<i64: 32, 128>}, {transform_indices = @transform_2, window_bounds = array<i64: 8, 1>}, {transform_indices = @transform_3, window_bounds = array<i64: 8, 32>}]} {
    %c8_i32 = arith.constant 8 : i32
    %0 = arith.muli %arg1, %c8_i32 : i32
    %c0_i32 = arith.constant 0 : i32
    %1 = arith.cmpi eq, %arg1, %c0_i32 : i32
    %2 = arith.extui %1 : i1 to i32
    %c0_i32_0 = arith.constant 0 : i32
    %3 = arith.cmpi ne, %2, %c0_i32_0 : i32
    scf.if %3 {
      %cst = arith.constant 0.000000e+00 : f32
      %11 = vector.broadcast %cst : f32 to vector<8x32xf32>
      %c0_4 = arith.constant 0 : index
      %c0_5 = arith.constant 0 : index
      %12 = vector.load %arg7[%c0_4, %c0_5] : memref<8x32xf32, #tpu.memory_space<vmem>>, vector<8x32xf32>
      tpu.vector_store %arg7[%c0_4, %c0_5], %11 {strides = array<i32>} : memref<8x32xf32, #tpu.memory_space<vmem>>, vector<8x32xf32>,
      %cst_6 = arith.constant 0.000000e+00 : f32
      %13 = vector.broadcast %cst_6 : f32 to vector<8x32xf32>
      %c0_7 = arith.constant 0 : index
      %c0_8 = arith.constant 0 : index
      %14 = vector.load %arg8[%c0_7, %c0_8] : memref<8x32xf32, #tpu.memory_space<vmem>>, vector<8x32xf32>
      tpu.vector_store %arg8[%c0_7, %c0_8], %13 {strides = array<i32>} : memref<8x32xf32, #tpu.memory_space<vmem>>, vector<8x32xf32>,
    } else {
    }
    %c0 = arith.constant 0 : index
    %4 = memref.load %arg2[%c0] : memref<1xi32, #tpu.memory_space<smem>>
    %5 = arith.cmpi slt, %0, %4 : i32
    %6 = arith.extui %5 : i1 to i32
    %c0_i32_1 = arith.constant 0 : i32
    %7 = arith.cmpi ne, %6, %c0_i32_1 : i32
    scf.if %7 {
      %c0_4 = arith.constant 0 : index
      %c0_5 = arith.constant 0 : index
      %11 = vector.load %arg4[%c0_4, %c0_5] : memref<32x128xf32, #tpu.memory_space<vmem>>, vector<32x128xf32>
      %c0_6 = arith.constant 0 : index
      %c0_7 = arith.constant 0 : index
      %12 = vector.load %arg5[%c0_6, %c0_7] : memref<8x1xi32, #tpu.memory_space<vmem>>, vector<8x1xi32>
      %c0_i32_8 = arith.constant 0 : i32
      %13 = arith.addi %0, %c0_i32_8 : i32
      %c0_9 = arith.constant 0 : index
      %c0_10 = arith.constant 0 : index
      %14 = vector.load %arg7[%c0_9, %c0_10] : memref<8x32xf32, #tpu.memory_space<vmem>>, vector<8x32xf32>
      %c0_11 = arith.constant 0 : index
      %c0_12 = arith.constant 0 : index
      %15 = vector.load %arg8[%c0_11, %c0_12] : memref<8x32xf32, #tpu.memory_space<vmem>>, vector<8x32xf32>
      %16 = arith.index_cast %c0_i32_8 : i32 to index
      %c0_13 = arith.constant 0 : index
      %c0_14 = arith.constant 0 : index
      %17 = vector.load %arg3[%16, %c0_13, %c0_14] : memref<8x8x128xf32, #tpu.memory_space<vmem>>, vector<1x8x128xf32>
      %18 = vector.shape_cast %17 : vector<1x8x128xf32> to vector<8x128xf32>
      %cst = arith.constant dense<0.000000e+00> : vector<8x128xf32>
      %19 = tpu.matmul %14, %11, %cst {dimension_numbers = #tpu.dot_dimension_numbers<[1], [0], [0], [1], [0, 0, 1, 1], [], []>} : vector<8x32xf32>, vector<32x128xf32>, vector<8x128xf32> -> vector<8x128xf32>
      %20 = arith.addf %18, %19 : vector<8x128xf32>
      %21 = vector.extract_strided_slice %20 {offsets = [0, 0], sizes = [8, 32], strides = [1, 1]} : vector<8x128xf32> to vector<8x32xf32>
      %22 = arith.negf %21 : vector<8x32xf32>
      %23 = math.exp %22 : vector<8x32xf32>
      %cst_15 = arith.constant 1.000000e+00 : f32
      %24 = vector.broadcast %cst_15 : f32 to vector<8x32xf32>
      %25 = arith.addf %24, %23 : vector<8x32xf32>
      %26 = arith.divf %24, %25 : vector<8x32xf32>
      %27 = vector.extract_strided_slice %20 {offsets = [0, 32], sizes = [8, 32], strides = [1, 1]} : vector<8x128xf32> to vector<8x32xf32>
      %28 = arith.negf %27 : vector<8x32xf32>
      %29 = math.exp %28 : vector<8x32xf32>
      %cst_16 = arith.constant 1.000000e+00 : f32
      %30 = vector.broadcast %cst_16 : f32 to vector<8x32xf32>
      %31 = arith.addf %30, %29 : vector<8x32xf32>
      %32 = arith.divf %30, %31 : vector<8x32xf32>
      %33 = vector.extract_strided_slice %20 {offsets = [0, 64], sizes = [8, 32], strides = [1, 1]} : vector<8x128xf32> to vector<8x32xf32>
      %34 = math.tanh %33 : vector<8x32xf32>
      %35 = vector.extract_strided_slice %20 {offsets = [0, 96], sizes = [8, 32], strides = [1, 1]} : vector<8x128xf32> to vector<8x32xf32>
      %36 = arith.negf %35 : vector<8x32xf32>
      %37 = math.exp %36 : vector<8x32xf32>
      %cst_17 = arith.constant 1.000000e+00 : f32
      %38 = vector.broadcast %cst_17 : f32 to vector<8x32xf32>
      %39 = arith.addf %38, %37 : vector<8x32xf32>
      %40 = arith.divf %38, %39 : vector<8x32xf32>
      %41 = arith.mulf %32, %15 : vector<8x32xf32>
      %42 = arith.mulf %26, %34 : vector<8x32xf32>
      %43 = arith.addf %41, %42 : vector<8x32xf32>
      %44 = math.tanh %43 : vector<8x32xf32>
      %45 = arith.mulf %40, %44 : vector<8x32xf32>
      %46 = vector.broadcast %13 : i32 to vector<8x1xi32>
      %47 = arith.cmpi slt, %46, %12 : vector<8x1xi32>
      %48 = vector.shape_cast %47 : vector<8x1xi1> to vector<8x1xi1>
      %49 = vector.broadcast %48 : vector<8x1xi1> to vector<8x32xi1>
      %50 = arith.select %49, %45, %14 : vector<8x32xi1>, vector<8x32xf32>
      %c0_18 = arith.constant 0 : index
      %c0_19 = arith.constant 0 : index
      %51 = vector.load %arg7[%c0_18, %c0_19] : memref<8x32xf32, #tpu.memory_space<vmem>>, vector<8x32xf32>
      tpu.vector_store %arg7[%c0_18, %c0_19], %50 {strides = array<i32>} : memref<8x32xf32, #tpu.memory_space<vmem>>, vector<8x32xf32>,
      %52 = vector.shape_cast %47 : vector<8x1xi1> to vector<8x1xi1>
      %53 = vector.broadcast %52 : vector<8x1xi1> to vector<8x32xi1>
      %54 = arith.select %53, %43, %15 : vector<8x32xi1>, vector<8x32xf32>
      %c0_20 = arith.constant 0 : index
      %c0_21 = arith.constant 0 : index
      %55 = vector.load %arg8[%c0_20, %c0_21] : memref<8x32xf32, #tpu.memory_space<vmem>>, vector<8x32xf32>
      tpu.vector_store %arg8[%c0_20, %c0_21], %54 {strides = array<i32>} : memref<8x32xf32, #tpu.memory_space<vmem>>, vector<8x32xf32>,
      %c1_i32 = arith.constant 1 : i32
      %56 = arith.addi %0, %c1_i32 : i32
      %c0_22 = arith.constant 0 : index
      %c0_23 = arith.constant 0 : index
      %57 = vector.load %arg7[%c0_22, %c0_23] : memref<8x32xf32, #tpu.memory_space<vmem>>, vector<8x32xf32>
      %c0_24 = arith.constant 0 : index
      %c0_25 = arith.constant 0 : index
      %58 = vector.load %arg8[%c0_24, %c0_25] : memref<8x32xf32, #tpu.memory_space<vmem>>, vector<8x32xf32>
      %59 = arith.index_cast %c1_i32 : i32 to index
      %c0_26 = arith.constant 0 : index
      %c0_27 = arith.constant 0 : index
      %60 = vector.load %arg3[%59, %c0_26, %c0_27] : memref<8x8x128xf32, #tpu.memory_space<vmem>>, vector<1x8x128xf32>
      %61 = vector.shape_cast %60 : vector<1x8x128xf32> to vector<8x128xf32>
      %cst_28 = arith.constant dense<0.000000e+00> : vector<8x128xf32>
      %62 = tpu.matmul %57, %11, %cst_28 {dimension_numbers = #tpu.dot_dimension_numbers<[1], [0], [0], [1], [0, 0, 1, 1], [], []>} : vector<8x32xf32>, vector<32x128xf32>, vector<8x128xf32> -> vector<8x128xf32>
      %63 = arith.addf %61, %62 : vector<8x128xf32>
      %64 = vector.extract_strided_slice %63 {offsets = [0, 0], sizes = [8, 32], strides = [1, 1]} : vector<8x128xf32> to vector<8x32xf32>
      %65 = arith.negf %64 : vector<8x32xf32>
      %66 = math.exp %65 : vector<8x32xf32>
      %cst_29 = arith.constant 1.000000e+00 : f32
      %67 = vector.broadcast %cst_29 : f32 to vector<8x32xf32>
      %68 = arith.addf %67, %66 : vector<8x32xf32>
      %69 = arith.divf %67, %68 : vector<8x32xf32>
      %70 = vector.extract_strided_slice %63 {offsets = [0, 32], sizes = [8, 32], strides = [1, 1]} : vector<8x128xf32> to vector<8x32xf32>
      %71 = arith.negf %70 : vector<8x32xf32>
      %72 = math.exp %71 : vector<8x32xf32>
      %cst_30 = arith.constant 1.000000e+00 : f32
      %73 = vector.broadcast %cst_30 : f32 to vector<8x32xf32>
      %74 = arith.addf %73, %72 : vector<8x32xf32>
      %75 = arith.divf %73, %74 : vector<8x32xf32>
      %76 = vector.extract_strided_slice %63 {offsets = [0, 64], sizes = [8, 32], strides = [1, 1]} : vector<8x128xf32> to vector<8x32xf32>
      %77 = math.tanh %76 : vector<8x32xf32>
      %78 = vector.extract_strided_slice %63 {offsets = [0, 96], sizes = [8, 32], strides = [1, 1]} : vector<8x128xf32> to vector<8x32xf32>
      %79 = arith.negf %78 : vector<8x32xf32>
      %80 = math.exp %79 : vector<8x32xf32>
      %cst_31 = arith.constant 1.000000e+00 : f32
      %81 = vector.broadcast %cst_31 : f32 to vector<8x32xf32>
      %82 = arith.addf %81, %80 : vector<8x32xf32>
      %83 = arith.divf %81, %82 : vector<8x32xf32>
      %84 = arith.mulf %75, %58 : vector<8x32xf32>
      %85 = arith.mulf %69, %77 : vector<8x32xf32>
      %86 = arith.addf %84, %85 : vector<8x32xf32>
      %87 = math.tanh %86 : vector<8x32xf32>
      %88 = arith.mulf %83, %87 : vector<8x32xf32>
      %89 = vector.broadcast %56 : i32 to vector<8x1xi32>
      %90 = arith.cmpi slt, %89, %12 : vector<8x1xi32>
      %91 = vector.shape_cast %90 : vector<8x1xi1> to vector<8x1xi1>
      %92 = vector.broadcast %91 : vector<8x1xi1> to vector<8x32xi1>
      %93 = arith.select %92, %88, %57 : vector<8x32xi1>, vector<8x32xf32>
      %c0_32 = arith.constant 0 : index
      %c0_33 = arith.constant 0 : index
      %94 = vector.load %arg7[%c0_32, %c0_33] : memref<8x32xf32, #tpu.memory_space<vmem>>, vector<8x32xf32>
      tpu.vector_store %arg7[%c0_32, %c0_33], %93 {strides = array<i32>} : memref<8x32xf32, #tpu.memory_space<vmem>>, vector<8x32xf32>,
      %95 = vector.shape_cast %90 : vector<8x1xi1> to vector<8x1xi1>
      %96 = vector.broadcast %95 : vector<8x1xi1> to vector<8x32xi1>
      %97 = arith.select %96, %86, %58 : vector<8x32xi1>, vector<8x32xf32>
      %c0_34 = arith.constant 0 : index
      %c0_35 = arith.constant 0 : index
      %98 = vector.load %arg8[%c0_34, %c0_35] : memref<8x32xf32, #tpu.memory_space<vmem>>, vector<8x32xf32>
      tpu.vector_store %arg8[%c0_34, %c0_35], %97 {strides = array<i32>} : memref<8x32xf32, #tpu.memory_space<vmem>>, vector<8x32xf32>,
      %c2_i32 = arith.constant 2 : i32
      %99 = arith.addi %0, %c2_i32 : i32
      %c0_36 = arith.constant 0 : index
      %c0_37 = arith.constant 0 : index
      %100 = vector.load %arg7[%c0_36, %c0_37] : memref<8x32xf32, #tpu.memory_space<vmem>>, vector<8x32xf32>
      %c0_38 = arith.constant 0 : index
      %c0_39 = arith.constant 0 : index
      %101 = vector.load %arg8[%c0_38, %c0_39] : memref<8x32xf32, #tpu.memory_space<vmem>>, vector<8x32xf32>
      %102 = arith.index_cast %c2_i32 : i32 to index
      %c0_40 = arith.constant 0 : index
      %c0_41 = arith.constant 0 : index
      %103 = vector.load %arg3[%102, %c0_40, %c0_41] : memref<8x8x128xf32, #tpu.memory_space<vmem>>, vector<1x8x128xf32>
      %104 = vector.shape_cast %103 : vector<1x8x128xf32> to vector<8x128xf32>
      %cst_42 = arith.constant dense<0.000000e+00> : vector<8x128xf32>
      %105 = tpu.matmul %100, %11, %cst_42 {dimension_numbers = #tpu.dot_dimension_numbers<[1], [0], [0], [1], [0, 0, 1, 1], [], []>} : vector<8x32xf32>, vector<32x128xf32>, vector<8x128xf32> -> vector<8x128xf32>
      %106 = arith.addf %104, %105 : vector<8x128xf32>
      %107 = vector.extract_strided_slice %106 {offsets = [0, 0], sizes = [8, 32], strides = [1, 1]} : vector<8x128xf32> to vector<8x32xf32>
      %108 = arith.negf %107 : vector<8x32xf32>
      %109 = math.exp %108 : vector<8x32xf32>
      %cst_43 = arith.constant 1.000000e+00 : f32
      %110 = vector.broadcast %cst_43 : f32 to vector<8x32xf32>
      %111 = arith.addf %110, %109 : vector<8x32xf32>
      %112 = arith.divf %110, %111 : vector<8x32xf32>
      %113 = vector.extract_strided_slice %106 {offsets = [0, 32], sizes = [8, 32], strides = [1, 1]} : vector<8x128xf32> to vector<8x32xf32>
      %114 = arith.negf %113 : vector<8x32xf32>
      %115 = math.exp %114 : vector<8x32xf32>
      %cst_44 = arith.constant 1.000000e+00 : f32
      %116 = vector.broadcast %cst_44 : f32 to vector<8x32xf32>
      %117 = arith.addf %116, %115 : vector<8x32xf32>
      %118 = arith.divf %116, %117 : vector<8x32xf32>
      %119 = vector.extract_strided_slice %106 {offsets = [0, 64], sizes = [8, 32], strides = [1, 1]} : vector<8x128xf32> to vector<8x32xf32>
      %120 = math.tanh %119 : vector<8x32xf32>
      %121 = vector.extract_strided_slice %106 {offsets = [0, 96], sizes = [8, 32], strides = [1, 1]} : vector<8x128xf32> to vector<8x32xf32>
      %122 = arith.negf %121 : vector<8x32xf32>
      %123 = math.exp %122 : vector<8x32xf32>
      %cst_45 = arith.constant 1.000000e+00 : f32
      %124 = vector.broadcast %cst_45 : f32 to vector<8x32xf32>
      %125 = arith.addf %124, %123 : vector<8x32xf32>
      %126 = arith.divf %124, %125 : vector<8x32xf32>
      %127 = arith.mulf %118, %101 : vector<8x32xf32>
      %128 = arith.mulf %112, %120 : vector<8x32xf32>
      %129 = arith.addf %127, %128 : vector<8x32xf32>
      %130 = math.tanh %129 : vector<8x32xf32>
      %131 = arith.mulf %126, %130 : vector<8x32xf32>
      %132 = vector.broadcast %99 : i32 to vector<8x1xi32>
      %133 = arith.cmpi slt, %132, %12 : vector<8x1xi32>
      %134 = vector.shape_cast %133 : vector<8x1xi1> to vector<8x1xi1>
      %135 = vector.broadcast %134 : vector<8x1xi1> to vector<8x32xi1>
      %136 = arith.select %135, %131, %100 : vector<8x32xi1>, vector<8x32xf32>
      %c0_46 = arith.constant 0 : index
      %c0_47 = arith.constant 0 : index
      %137 = vector.load %arg7[%c0_46, %c0_47] : memref<8x32xf32, #tpu.memory_space<vmem>>, vector<8x32xf32>
      tpu.vector_store %arg7[%c0_46, %c0_47], %136 {strides = array<i32>} : memref<8x32xf32, #tpu.memory_space<vmem>>, vector<8x32xf32>,
      %138 = vector.shape_cast %133 : vector<8x1xi1> to vector<8x1xi1>
      %139 = vector.broadcast %138 : vector<8x1xi1> to vector<8x32xi1>
      %140 = arith.select %139, %129, %101 : vector<8x32xi1>, vector<8x32xf32>
      %c0_48 = arith.constant 0 : index
      %c0_49 = arith.constant 0 : index
      %141 = vector.load %arg8[%c0_48, %c0_49] : memref<8x32xf32, #tpu.memory_space<vmem>>, vector<8x32xf32>
      tpu.vector_store %arg8[%c0_48, %c0_49], %140 {strides = array<i32>} : memref<8x32xf32, #tpu.memory_space<vmem>>, vector<8x32xf32>,
      %c3_i32 = arith.constant 3 : i32
      %142 = arith.addi %0, %c3_i32 : i32
      %c0_50 = arith.constant 0 : index
      %c0_51 = arith.constant 0 : index
      %143 = vector.load %arg7[%c0_50, %c0_51] : memref<8x32xf32, #tpu.memory_space<vmem>>, vector<8x32xf32>
      %c0_52 = arith.constant 0 : index
      %c0_53 = arith.constant 0 : index
      %144 = vector.load %arg8[%c0_52, %c0_53] : memref<8x32xf32, #tpu.memory_space<vmem>>, vector<8x32xf32>
      %145 = arith.index_cast %c3_i32 : i32 to index
      %c0_54 = arith.constant 0 : index
      %c0_55 = arith.constant 0 : index
      %146 = vector.load %arg3[%145, %c0_54, %c0_55] : memref<8x8x128xf32, #tpu.memory_space<vmem>>, vector<1x8x128xf32>
      %147 = vector.shape_cast %146 : vector<1x8x128xf32> to vector<8x128xf32>
      %cst_56 = arith.constant dense<0.000000e+00> : vector<8x128xf32>
      %148 = tpu.matmul %143, %11, %cst_56 {dimension_numbers = #tpu.dot_dimension_numbers<[1], [0], [0], [1], [0, 0, 1, 1], [], []>} : vector<8x32xf32>, vector<32x128xf32>, vector<8x128xf32> -> vector<8x128xf32>
      %149 = arith.addf %147, %148 : vector<8x128xf32>
      %150 = vector.extract_strided_slice %149 {offsets = [0, 0], sizes = [8, 32], strides = [1, 1]} : vector<8x128xf32> to vector<8x32xf32>
      %151 = arith.negf %150 : vector<8x32xf32>
      %152 = math.exp %151 : vector<8x32xf32>
      %cst_57 = arith.constant 1.000000e+00 : f32
      %153 = vector.broadcast %cst_57 : f32 to vector<8x32xf32>
      %154 = arith.addf %153, %152 : vector<8x32xf32>
      %155 = arith.divf %153, %154 : vector<8x32xf32>
      %156 = vector.extract_strided_slice %149 {offsets = [0, 32], sizes = [8, 32], strides = [1, 1]} : vector<8x128xf32> to vector<8x32xf32>
      %157 = arith.negf %156 : vector<8x32xf32>
      %158 = math.exp %157 : vector<8x32xf32>
      %cst_58 = arith.constant 1.000000e+00 : f32
      %159 = vector.broadcast %cst_58 : f32 to vector<8x32xf32>
      %160 = arith.addf %159, %158 : vector<8x32xf32>
      %161 = arith.divf %159, %160 : vector<8x32xf32>
      %162 = vector.extract_strided_slice %149 {offsets = [0, 64], sizes = [8, 32], strides = [1, 1]} : vector<8x128xf32> to vector<8x32xf32>
      %163 = math.tanh %162 : vector<8x32xf32>
      %164 = vector.extract_strided_slice %149 {offsets = [0, 96], sizes = [8, 32], strides = [1, 1]} : vector<8x128xf32> to vector<8x32xf32>
      %165 = arith.negf %164 : vector<8x32xf32>
      %166 = math.exp %165 : vector<8x32xf32>
      %cst_59 = arith.constant 1.000000e+00 : f32
      %167 = vector.broadcast %cst_59 : f32 to vector<8x32xf32>
      %168 = arith.addf %167, %166 : vector<8x32xf32>
      %169 = arith.divf %167, %168 : vector<8x32xf32>
      %170 = arith.mulf %161, %144 : vector<8x32xf32>
      %171 = arith.mulf %155, %163 : vector<8x32xf32>
      %172 = arith.addf %170, %171 : vector<8x32xf32>
      %173 = math.tanh %172 : vector<8x32xf32>
      %174 = arith.mulf %169, %173 : vector<8x32xf32>
      %175 = vector.broadcast %142 : i32 to vector<8x1xi32>
      %176 = arith.cmpi slt, %175, %12 : vector<8x1xi32>
      %177 = vector.shape_cast %176 : vector<8x1xi1> to vector<8x1xi1>
      %178 = vector.broadcast %177 : vector<8x1xi1> to vector<8x32xi1>
      %179 = arith.select %178, %174, %143 : vector<8x32xi1>, vector<8x32xf32>
      %c0_60 = arith.constant 0 : index
      %c0_61 = arith.constant 0 : index
      %180 = vector.load %arg7[%c0_60, %c0_61] : memref<8x32xf32, #tpu.memory_space<vmem>>, vector<8x32xf32>
      tpu.vector_store %arg7[%c0_60, %c0_61], %179 {strides = array<i32>} : memref<8x32xf32, #tpu.memory_space<vmem>>, vector<8x32xf32>,
      %181 = vector.shape_cast %176 : vector<8x1xi1> to vector<8x1xi1>
      %182 = vector.broadcast %181 : vector<8x1xi1> to vector<8x32xi1>
      %183 = arith.select %182, %172, %144 : vector<8x32xi1>, vector<8x32xf32>
      %c0_62 = arith.constant 0 : index
      %c0_63 = arith.constant 0 : index
      %184 = vector.load %arg8[%c0_62, %c0_63] : memref<8x32xf32, #tpu.memory_space<vmem>>, vector<8x32xf32>
      tpu.vector_store %arg8[%c0_62, %c0_63], %183 {strides = array<i32>} : memref<8x32xf32, #tpu.memory_space<vmem>>, vector<8x32xf32>,
      %c4_i32 = arith.constant 4 : i32
      %185 = arith.addi %0, %c4_i32 : i32
      %c0_64 = arith.constant 0 : index
      %c0_65 = arith.constant 0 : index
      %186 = vector.load %arg7[%c0_64, %c0_65] : memref<8x32xf32, #tpu.memory_space<vmem>>, vector<8x32xf32>
      %c0_66 = arith.constant 0 : index
      %c0_67 = arith.constant 0 : index
      %187 = vector.load %arg8[%c0_66, %c0_67] : memref<8x32xf32, #tpu.memory_space<vmem>>, vector<8x32xf32>
      %188 = arith.index_cast %c4_i32 : i32 to index
      %c0_68 = arith.constant 0 : index
      %c0_69 = arith.constant 0 : index
      %189 = vector.load %arg3[%188, %c0_68, %c0_69] : memref<8x8x128xf32, #tpu.memory_space<vmem>>, vector<1x8x128xf32>
      %190 = vector.shape_cast %189 : vector<1x8x128xf32> to vector<8x128xf32>
      %cst_70 = arith.constant dense<0.000000e+00> : vector<8x128xf32>
      %191 = tpu.matmul %186, %11, %cst_70 {dimension_numbers = #tpu.dot_dimension_numbers<[1], [0], [0], [1], [0, 0, 1, 1], [], []>} : vector<8x32xf32>, vector<32x128xf32>, vector<8x128xf32> -> vector<8x128xf32>
      %192 = arith.addf %190, %191 : vector<8x128xf32>
      %193 = vector.extract_strided_slice %192 {offsets = [0, 0], sizes = [8, 32], strides = [1, 1]} : vector<8x128xf32> to vector<8x32xf32>
      %194 = arith.negf %193 : vector<8x32xf32>
      %195 = math.exp %194 : vector<8x32xf32>
      %cst_71 = arith.constant 1.000000e+00 : f32
      %196 = vector.broadcast %cst_71 : f32 to vector<8x32xf32>
      %197 = arith.addf %196, %195 : vector<8x32xf32>
      %198 = arith.divf %196, %197 : vector<8x32xf32>
      %199 = vector.extract_strided_slice %192 {offsets = [0, 32], sizes = [8, 32], strides = [1, 1]} : vector<8x128xf32> to vector<8x32xf32>
      %200 = arith.negf %199 : vector<8x32xf32>
      %201 = math.exp %200 : vector<8x32xf32>
      %cst_72 = arith.constant 1.000000e+00 : f32
      %202 = vector.broadcast %cst_72 : f32 to vector<8x32xf32>
      %203 = arith.addf %202, %201 : vector<8x32xf32>
      %204 = arith.divf %202, %203 : vector<8x32xf32>
      %205 = vector.extract_strided_slice %192 {offsets = [0, 64], sizes = [8, 32], strides = [1, 1]} : vector<8x128xf32> to vector<8x32xf32>
      %206 = math.tanh %205 : vector<8x32xf32>
      %207 = vector.extract_strided_slice %192 {offsets = [0, 96], sizes = [8, 32], strides = [1, 1]} : vector<8x128xf32> to vector<8x32xf32>
      %208 = arith.negf %207 : vector<8x32xf32>
      %209 = math.exp %208 : vector<8x32xf32>
      %cst_73 = arith.constant 1.000000e+00 : f32
      %210 = vector.broadcast %cst_73 : f32 to vector<8x32xf32>
      %211 = arith.addf %210, %209 : vector<8x32xf32>
      %212 = arith.divf %210, %211 : vector<8x32xf32>
      %213 = arith.mulf %204, %187 : vector<8x32xf32>
      %214 = arith.mulf %198, %206 : vector<8x32xf32>
      %215 = arith.addf %213, %214 : vector<8x32xf32>
      %216 = math.tanh %215 : vector<8x32xf32>
      %217 = arith.mulf %212, %216 : vector<8x32xf32>
      %218 = vector.broadcast %185 : i32 to vector<8x1xi32>
      %219 = arith.cmpi slt, %218, %12 : vector<8x1xi32>
      %220 = vector.shape_cast %219 : vector<8x1xi1> to vector<8x1xi1>
      %221 = vector.broadcast %220 : vector<8x1xi1> to vector<8x32xi1>
      %222 = arith.select %221, %217, %186 : vector<8x32xi1>, vector<8x32xf32>
      %c0_74 = arith.constant 0 : index
      %c0_75 = arith.constant 0 : index
      %223 = vector.load %arg7[%c0_74, %c0_75] : memref<8x32xf32, #tpu.memory_space<vmem>>, vector<8x32xf32>
      tpu.vector_store %arg7[%c0_74, %c0_75], %222 {strides = array<i32>} : memref<8x32xf32, #tpu.memory_space<vmem>>, vector<8x32xf32>,
      %224 = vector.shape_cast %219 : vector<8x1xi1> to vector<8x1xi1>
      %225 = vector.broadcast %224 : vector<8x1xi1> to vector<8x32xi1>
      %226 = arith.select %225, %215, %187 : vector<8x32xi1>, vector<8x32xf32>
      %c0_76 = arith.constant 0 : index
      %c0_77 = arith.constant 0 : index
      %227 = vector.load %arg8[%c0_76, %c0_77] : memref<8x32xf32, #tpu.memory_space<vmem>>, vector<8x32xf32>
      tpu.vector_store %arg8[%c0_76, %c0_77], %226 {strides = array<i32>} : memref<8x32xf32, #tpu.memory_space<vmem>>, vector<8x32xf32>,
      %c5_i32 = arith.constant 5 : i32
      %228 = arith.addi %0, %c5_i32 : i32
      %c0_78 = arith.constant 0 : index
      %c0_79 = arith.constant 0 : index
      %229 = vector.load %arg7[%c0_78, %c0_79] : memref<8x32xf32, #tpu.memory_space<vmem>>, vector<8x32xf32>
      %c0_80 = arith.constant 0 : index
      %c0_81 = arith.constant 0 : index
      %230 = vector.load %arg8[%c0_80, %c0_81] : memref<8x32xf32, #tpu.memory_space<vmem>>, vector<8x32xf32>
      %231 = arith.index_cast %c5_i32 : i32 to index
      %c0_82 = arith.constant 0 : index
      %c0_83 = arith.constant 0 : index
      %232 = vector.load %arg3[%231, %c0_82, %c0_83] : memref<8x8x128xf32, #tpu.memory_space<vmem>>, vector<1x8x128xf32>
      %233 = vector.shape_cast %232 : vector<1x8x128xf32> to vector<8x128xf32>
      %cst_84 = arith.constant dense<0.000000e+00> : vector<8x128xf32>
      %234 = tpu.matmul %229, %11, %cst_84 {dimension_numbers = #tpu.dot_dimension_numbers<[1], [0], [0], [1], [0, 0, 1, 1], [], []>} : vector<8x32xf32>, vector<32x128xf32>, vector<8x128xf32> -> vector<8x128xf32>
      %235 = arith.addf %233, %234 : vector<8x128xf32>
      %236 = vector.extract_strided_slice %235 {offsets = [0, 0], sizes = [8, 32], strides = [1, 1]} : vector<8x128xf32> to vector<8x32xf32>
      %237 = arith.negf %236 : vector<8x32xf32>
      %238 = math.exp %237 : vector<8x32xf32>
      %cst_85 = arith.constant 1.000000e+00 : f32
      %239 = vector.broadcast %cst_85 : f32 to vector<8x32xf32>
      %240 = arith.addf %239, %238 : vector<8x32xf32>
      %241 = arith.divf %239, %240 : vector<8x32xf32>
      %242 = vector.extract_strided_slice %235 {offsets = [0, 32], sizes = [8, 32], strides = [1, 1]} : vector<8x128xf32> to vector<8x32xf32>
      %243 = arith.negf %242 : vector<8x32xf32>
      %244 = math.exp %243 : vector<8x32xf32>
      %cst_86 = arith.constant 1.000000e+00 : f32
      %245 = vector.broadcast %cst_86 : f32 to vector<8x32xf32>
      %246 = arith.addf %245, %244 : vector<8x32xf32>
      %247 = arith.divf %245, %246 : vector<8x32xf32>
      %248 = vector.extract_strided_slice %235 {offsets = [0, 64], sizes = [8, 32], strides = [1, 1]} : vector<8x128xf32> to vector<8x32xf32>
      %249 = math.tanh %248 : vector<8x32xf32>
      %250 = vector.extract_strided_slice %235 {offsets = [0, 96], sizes = [8, 32], strides = [1, 1]} : vector<8x128xf32> to vector<8x32xf32>
      %251 = arith.negf %250 : vector<8x32xf32>
      %252 = math.exp %251 : vector<8x32xf32>
      %cst_87 = arith.constant 1.000000e+00 : f32
      %253 = vector.broadcast %cst_87 : f32 to vector<8x32xf32>
      %254 = arith.addf %253, %252 : vector<8x32xf32>
      %255 = arith.divf %253, %254 : vector<8x32xf32>
      %256 = arith.mulf %247, %230 : vector<8x32xf32>
      %257 = arith.mulf %241, %249 : vector<8x32xf32>
      %258 = arith.addf %256, %257 : vector<8x32xf32>
      %259 = math.tanh %258 : vector<8x32xf32>
      %260 = arith.mulf %255, %259 : vector<8x32xf32>
      %261 = vector.broadcast %228 : i32 to vector<8x1xi32>
      %262 = arith.cmpi slt, %261, %12 : vector<8x1xi32>
      %263 = vector.shape_cast %262 : vector<8x1xi1> to vector<8x1xi1>
      %264 = vector.broadcast %263 : vector<8x1xi1> to vector<8x32xi1>
      %265 = arith.select %264, %260, %229 : vector<8x32xi1>, vector<8x32xf32>
      %c0_88 = arith.constant 0 : index
      %c0_89 = arith.constant 0 : index
      %266 = vector.load %arg7[%c0_88, %c0_89] : memref<8x32xf32, #tpu.memory_space<vmem>>, vector<8x32xf32>
      tpu.vector_store %arg7[%c0_88, %c0_89], %265 {strides = array<i32>} : memref<8x32xf32, #tpu.memory_space<vmem>>, vector<8x32xf32>,
      %267 = vector.shape_cast %262 : vector<8x1xi1> to vector<8x1xi1>
      %268 = vector.broadcast %267 : vector<8x1xi1> to vector<8x32xi1>
      %269 = arith.select %268, %258, %230 : vector<8x32xi1>, vector<8x32xf32>
      %c0_90 = arith.constant 0 : index
      %c0_91 = arith.constant 0 : index
      %270 = vector.load %arg8[%c0_90, %c0_91] : memref<8x32xf32, #tpu.memory_space<vmem>>, vector<8x32xf32>
      tpu.vector_store %arg8[%c0_90, %c0_91], %269 {strides = array<i32>} : memref<8x32xf32, #tpu.memory_space<vmem>>, vector<8x32xf32>,
      %c6_i32 = arith.constant 6 : i32
      %271 = arith.addi %0, %c6_i32 : i32
      %c0_92 = arith.constant 0 : index
      %c0_93 = arith.constant 0 : index
      %272 = vector.load %arg7[%c0_92, %c0_93] : memref<8x32xf32, #tpu.memory_space<vmem>>, vector<8x32xf32>
      %c0_94 = arith.constant 0 : index
      %c0_95 = arith.constant 0 : index
      %273 = vector.load %arg8[%c0_94, %c0_95] : memref<8x32xf32, #tpu.memory_space<vmem>>, vector<8x32xf32>
      %274 = arith.index_cast %c6_i32 : i32 to index
      %c0_96 = arith.constant 0 : index
      %c0_97 = arith.constant 0 : index
      %275 = vector.load %arg3[%274, %c0_96, %c0_97] : memref<8x8x128xf32, #tpu.memory_space<vmem>>, vector<1x8x128xf32>
      %276 = vector.shape_cast %275 : vector<1x8x128xf32> to vector<8x128xf32>
      %cst_98 = arith.constant dense<0.000000e+00> : vector<8x128xf32>
      %277 = tpu.matmul %272, %11, %cst_98 {dimension_numbers = #tpu.dot_dimension_numbers<[1], [0], [0], [1], [0, 0, 1, 1], [], []>} : vector<8x32xf32>, vector<32x128xf32>, vector<8x128xf32> -> vector<8x128xf32>
      %278 = arith.addf %276, %277 : vector<8x128xf32>
      %279 = vector.extract_strided_slice %278 {offsets = [0, 0], sizes = [8, 32], strides = [1, 1]} : vector<8x128xf32> to vector<8x32xf32>
      %280 = arith.negf %279 : vector<8x32xf32>
      %281 = math.exp %280 : vector<8x32xf32>
      %cst_99 = arith.constant 1.000000e+00 : f32
      %282 = vector.broadcast %cst_99 : f32 to vector<8x32xf32>
      %283 = arith.addf %282, %281 : vector<8x32xf32>
      %284 = arith.divf %282, %283 : vector<8x32xf32>
      %285 = vector.extract_strided_slice %278 {offsets = [0, 32], sizes = [8, 32], strides = [1, 1]} : vector<8x128xf32> to vector<8x32xf32>
      %286 = arith.negf %285 : vector<8x32xf32>
      %287 = math.exp %286 : vector<8x32xf32>
      %cst_100 = arith.constant 1.000000e+00 : f32
      %288 = vector.broadcast %cst_100 : f32 to vector<8x32xf32>
      %289 = arith.addf %288, %287 : vector<8x32xf32>
      %290 = arith.divf %288, %289 : vector<8x32xf32>
      %291 = vector.extract_strided_slice %278 {offsets = [0, 64], sizes = [8, 32], strides = [1, 1]} : vector<8x128xf32> to vector<8x32xf32>
      %292 = math.tanh %291 : vector<8x32xf32>
      %293 = vector.extract_strided_slice %278 {offsets = [0, 96], sizes = [8, 32], strides = [1, 1]} : vector<8x128xf32> to vector<8x32xf32>
      %294 = arith.negf %293 : vector<8x32xf32>
      %295 = math.exp %294 : vector<8x32xf32>
      %cst_101 = arith.constant 1.000000e+00 : f32
      %296 = vector.broadcast %cst_101 : f32 to vector<8x32xf32>
      %297 = arith.addf %296, %295 : vector<8x32xf32>
      %298 = arith.divf %296, %297 : vector<8x32xf32>
      %299 = arith.mulf %290, %273 : vector<8x32xf32>
      %300 = arith.mulf %284, %292 : vector<8x32xf32>
      %301 = arith.addf %299, %300 : vector<8x32xf32>
      %302 = math.tanh %301 : vector<8x32xf32>
      %303 = arith.mulf %298, %302 : vector<8x32xf32>
      %304 = vector.broadcast %271 : i32 to vector<8x1xi32>
      %305 = arith.cmpi slt, %304, %12 : vector<8x1xi32>
      %306 = vector.shape_cast %305 : vector<8x1xi1> to vector<8x1xi1>
      %307 = vector.broadcast %306 : vector<8x1xi1> to vector<8x32xi1>
      %308 = arith.select %307, %303, %272 : vector<8x32xi1>, vector<8x32xf32>
      %c0_102 = arith.constant 0 : index
      %c0_103 = arith.constant 0 : index
      %309 = vector.load %arg7[%c0_102, %c0_103] : memref<8x32xf32, #tpu.memory_space<vmem>>, vector<8x32xf32>
      tpu.vector_store %arg7[%c0_102, %c0_103], %308 {strides = array<i32>} : memref<8x32xf32, #tpu.memory_space<vmem>>, vector<8x32xf32>,
      %310 = vector.shape_cast %305 : vector<8x1xi1> to vector<8x1xi1>
      %311 = vector.broadcast %310 : vector<8x1xi1> to vector<8x32xi1>
      %312 = arith.select %311, %301, %273 : vector<8x32xi1>, vector<8x32xf32>
      %c0_104 = arith.constant 0 : index
      %c0_105 = arith.constant 0 : index
      %313 = vector.load %arg8[%c0_104, %c0_105] : memref<8x32xf32, #tpu.memory_space<vmem>>, vector<8x32xf32>
      tpu.vector_store %arg8[%c0_104, %c0_105], %312 {strides = array<i32>} : memref<8x32xf32, #tpu.memory_space<vmem>>, vector<8x32xf32>,
      %c7_i32 = arith.constant 7 : i32
      %314 = arith.addi %0, %c7_i32 : i32
      %c0_106 = arith.constant 0 : index
      %c0_107 = arith.constant 0 : index
      %315 = vector.load %arg7[%c0_106, %c0_107] : memref<8x32xf32, #tpu.memory_space<vmem>>, vector<8x32xf32>
      %c0_108 = arith.constant 0 : index
      %c0_109 = arith.constant 0 : index
      %316 = vector.load %arg8[%c0_108, %c0_109] : memref<8x32xf32, #tpu.memory_space<vmem>>, vector<8x32xf32>
      %317 = arith.index_cast %c7_i32 : i32 to index
      %c0_110 = arith.constant 0 : index
      %c0_111 = arith.constant 0 : index
      %318 = vector.load %arg3[%317, %c0_110, %c0_111] : memref<8x8x128xf32, #tpu.memory_space<vmem>>, vector<1x8x128xf32>
      %319 = vector.shape_cast %318 : vector<1x8x128xf32> to vector<8x128xf32>
      %cst_112 = arith.constant dense<0.000000e+00> : vector<8x128xf32>
      %320 = tpu.matmul %315, %11, %cst_112 {dimension_numbers = #tpu.dot_dimension_numbers<[1], [0], [0], [1], [0, 0, 1, 1], [], []>} : vector<8x32xf32>, vector<32x128xf32>, vector<8x128xf32> -> vector<8x128xf32>
      %321 = arith.addf %319, %320 : vector<8x128xf32>
      %322 = vector.extract_strided_slice %321 {offsets = [0, 0], sizes = [8, 32], strides = [1, 1]} : vector<8x128xf32> to vector<8x32xf32>
      %323 = arith.negf %322 : vector<8x32xf32>
      %324 = math.exp %323 : vector<8x32xf32>
      %cst_113 = arith.constant 1.000000e+00 : f32
      %325 = vector.broadcast %cst_113 : f32 to vector<8x32xf32>
      %326 = arith.addf %325, %324 : vector<8x32xf32>
      %327 = arith.divf %325, %326 : vector<8x32xf32>
      %328 = vector.extract_strided_slice %321 {offsets = [0, 32], sizes = [8, 32], strides = [1, 1]} : vector<8x128xf32> to vector<8x32xf32>
      %329 = arith.negf %328 : vector<8x32xf32>
      %330 = math.exp %329 : vector<8x32xf32>
      %cst_114 = arith.constant 1.000000e+00 : f32
      %331 = vector.broadcast %cst_114 : f32 to vector<8x32xf32>
      %332 = arith.addf %331, %330 : vector<8x32xf32>
      %333 = arith.divf %331, %332 : vector<8x32xf32>
      %334 = vector.extract_strided_slice %321 {offsets = [0, 64], sizes = [8, 32], strides = [1, 1]} : vector<8x128xf32> to vector<8x32xf32>
      %335 = math.tanh %334 : vector<8x32xf32>
      %336 = vector.extract_strided_slice %321 {offsets = [0, 96], sizes = [8, 32], strides = [1, 1]} : vector<8x128xf32> to vector<8x32xf32>
      %337 = arith.negf %336 : vector<8x32xf32>
      %338 = math.exp %337 : vector<8x32xf32>
      %cst_115 = arith.constant 1.000000e+00 : f32
      %339 = vector.broadcast %cst_115 : f32 to vector<8x32xf32>
      %340 = arith.addf %339, %338 : vector<8x32xf32>
      %341 = arith.divf %339, %340 : vector<8x32xf32>
      %342 = arith.mulf %333, %316 : vector<8x32xf32>
      %343 = arith.mulf %327, %335 : vector<8x32xf32>
      %344 = arith.addf %342, %343 : vector<8x32xf32>
      %345 = math.tanh %344 : vector<8x32xf32>
      %346 = arith.mulf %341, %345 : vector<8x32xf32>
      %347 = vector.broadcast %314 : i32 to vector<8x1xi32>
      %348 = arith.cmpi slt, %347, %12 : vector<8x1xi32>
      %349 = vector.shape_cast %348 : vector<8x1xi1> to vector<8x1xi1>
      %350 = vector.broadcast %349 : vector<8x1xi1> to vector<8x32xi1>
      %351 = arith.select %350, %346, %315 : vector<8x32xi1>, vector<8x32xf32>
      %c0_116 = arith.constant 0 : index
      %c0_117 = arith.constant 0 : index
      %352 = vector.load %arg7[%c0_116, %c0_117] : memref<8x32xf32, #tpu.memory_space<vmem>>, vector<8x32xf32>
      tpu.vector_store %arg7[%c0_116, %c0_117], %351 {strides = array<i32>} : memref<8x32xf32, #tpu.memory_space<vmem>>, vector<8x32xf32>,
      %353 = vector.shape_cast %348 : vector<8x1xi1> to vector<8x1xi1>
      %354 = vector.broadcast %353 : vector<8x1xi1> to vector<8x32xi1>
      %355 = arith.select %354, %344, %316 : vector<8x32xi1>, vector<8x32xf32>
      %c0_118 = arith.constant 0 : index
      %c0_119 = arith.constant 0 : index
      %356 = vector.load %arg8[%c0_118, %c0_119] : memref<8x32xf32, #tpu.memory_space<vmem>>, vector<8x32xf32>
      tpu.vector_store %arg8[%c0_118, %c0_119], %355 {strides = array<i32>} : memref<8x32xf32, #tpu.memory_space<vmem>>, vector<8x32xf32>,
      %c8_i32_120 = arith.constant 8 : i32
    } else {
    }
    %c0_i32_2 = arith.constant 0 : i32
    %8 = arith.cmpi eq, %arg1, %c0_i32_2 : i32
    %9 = arith.extui %8 : i1 to i32
    %c0_i32_3 = arith.constant 0 : i32
    %10 = arith.cmpi ne, %9, %c0_i32_3 : i32
    scf.if %10 {
      %c0_4 = arith.constant 0 : index
      %c0_5 = arith.constant 0 : index
      %11 = vector.load %arg7[%c0_4, %c0_5] : memref<8x32xf32, #tpu.memory_space<vmem>>, vector<8x32xf32>
      %c0_6 = arith.constant 0 : index
      %c0_7 = arith.constant 0 : index
      %12 = vector.load %arg6[%c0_6, %c0_7] : memref<8x32xf32, #tpu.memory_space<vmem>>, vector<8x32xf32>
      tpu.vector_store %arg6[%c0_6, %c0_7], %11 {strides = array<i32>} : memref<8x32xf32, #tpu.memory_space<vmem>>, vector<8x32xf32>,
    } else {
    }
    return
  }
  func.func @transform_0(%arg0: i32, %arg1: i32, %arg2: memref<1xi32, #tpu.memory_space<smem>>) -> (i32, i32, i32) {
    %c0_i32 = arith.constant 0 : i32
    %c0_i32_0 = arith.constant 0 : i32
    return %arg1, %arg0, %c0_i32 : i32, i32, i32
  }
  func.func @transform_1(%arg0: i32, %arg1: i32, %arg2: memref<1xi32, #tpu.memory_space<smem>>) -> (i32, i32) {
    %c0_i32 = arith.constant 0 : i32
    %c0_i32_0 = arith.constant 0 : i32
    %c0_i32_1 = arith.constant 0 : i32
    return %c0_i32, %c0_i32_0 : i32, i32
  }
  func.func @transform_2(%arg0: i32, %arg1: i32, %arg2: memref<1xi32, #tpu.memory_space<smem>>) -> (i32, i32) {
    %c0_i32 = arith.constant 0 : i32
    %c0_i32_0 = arith.constant 0 : i32
    return %arg0, %c0_i32 : i32, i32
  }
  func.func @transform_3(%arg0: i32, %arg1: i32, %arg2: memref<1xi32, #tpu.memory_space<smem>>) -> (i32, i32) {
    %c0_i32 = arith.constant 0 : i32
    %c0_i32_0 = arith.constant 0 : i32
    return %arg0, %c0_i32 : i32, i32
  }
}

</mosaic_0001>

<bundles_post_ra>
// kernel: tpu_custom_call.1
= control target key start
LH: loop header
LB: loop body
LE: loop exit
PB: predicated region body
PF: predicated region fallthrough
CT: control target
= control target key end

     0   :  { %10 = vsyncpa [#allocation7], 0  ;;  %s1716_s0 = inlined_call_operand.<no memory space> [shape: s32[1], index: 0, kind: input, shape index: {}]   ;;  %s1717_s1 = inlined_call_operand.hbm [shape: f32[8,8,128], index: 1, kind: input, shape index: {}]   ;;  %s1718_s2 = inlined_call_operand.hbm [shape: f32[32,128], index: 2, kind: input, shape index: {}]   ;;  %s1719_s3 = inlined_call_operand.vmem [shape: s32[8,1], index: 3, kind: input, shape index: {}]   ;;  %s1720_s4 = inlined_call_operand.hbm [shape: f32[8,32], index: 4, kind: output, shape index: {}]  }
   0x1   :  { %11 = vsyncpa [#allocation10], 0 }
   0x2   :  { %12 = vsyncpa [#allocation8], 0  ;;  %s1469_s15 = smov [#allocation6]   ;;  %s1397_s19 = scalar_lea.hbm %s1717_s1, 1024 }
   0x3   :  { %s18_s16 = sshll.u32 %s1469_s15, 4  ;;  %p1398_p0 = scmp.ne.s32.totalorder %s1717_s1, %s1397_s19  ;;  %s19_s16 = int_to_ptr.vmem [resolvable:$true] %s18_s16 }
   0x4   :  { %p1401_p1 = scmp.lt.u32.totalorder %s1397_s19, %s1717_s1 }
   0x6   :  { %p1403_p2 = pnand %p1401_p1, %p1398_p0 }
   0x8   :  { %1406 = shalt.err (!%p1403_p2)
}
   0x9   :  { %s1407_s24 = scalar_lea.vmem %s19_s16, 1024  ;;  %p1412_p4 = scmp.lt.s32.totalorder %s19_s16, %s19_s16 }
   0xa   :  { %p1408_p3 = scmp.ne.s32.totalorder %s19_s16, %s1407_s24  ;;  %p1413_p5 = scmp.lt.s32.totalorder %s1407_s24, %s1407_s24 }
   0xc   :  { %p1414_p6 = por %p1413_p5, %p1412_p4 }
   0xe   :  { %p1415_p7 = pnand %p1414_p6, %p1408_p3 }
  0x10   :  { %1418 = shalt.err (!%p1415_p7)
}
  0x11   :  { %s1470_s25 = smov 128   ;;  %s1471_s26 = smov 8  }
  0x12   :  { %24 = dma.hbm_to_vmem [thread:$0]  %s1717_s1, 1024, %s19_s16, [#allocation7], %s1470_s25, %s1470_s25, %s1471_s26  }
  0x13   :  { %s1472_s29 = smov [#allocation9]   ;;  %s1419_s7 = scalar_lea.hbm %s1718_s2, 512 }
  0x14   :  { %s30_s30 = sshll.u32 %s1472_s29, 4  ;;  %p1420_p8 = scmp.ne.s32.totalorder %s1718_s2, %s1419_s7  ;;  %s31_s30 = int_to_ptr.vmem [resolvable:$true] %s30_s30 }
  0x15   :  { %p1423_p9 = scmp.lt.u32.totalorder %s1419_s7, %s1718_s2 }
  0x17   :  { %p1425_p10 = pnand %p1423_p9, %p1420_p8 }
  0x19   :  { %1428 = shalt.err (!%p1425_p10)
}
  0x1a   :  { %s1429_s12 = scalar_lea.vmem %s31_s30, 512  ;;  %p1434_p12 = scmp.lt.s32.totalorder %s31_s30, %s31_s30 }
  0x1b   :  { %p1430_p11 = scmp.ne.s32.totalorder %s31_s30, %s1429_s12  ;;  %p1435_p13 = scmp.lt.s32.totalorder %s1429_s12, %s1429_s12 }
  0x1d   :  { %p1436_p0 = por %p1435_p13, %p1434_p12 }
  0x1f   :  { %p1437_p1 = pnand %p1436_p0, %p1430_p11 }
  0x21   :  { %1440 = shalt.err (!%p1437_p1)
}
  0x22   :  { %36 = dma.hbm_to_vmem [thread:$0]  %s1718_s2, 512, %s31_s30, [#allocation10], %s1470_s25, %s1470_s25, %s1471_s26  }
  0x23   :  { %1463 = dma.done.wait [#allocation7], 1024  }
  0x24   :  { %1464 = vsyncadd [#allocation7], 4294966272 }
  0x25   :  { %1465 = dma.done.wait [#allocation10], 512  }
  0x26   :  { %1466 = vsyncadd [#allocation10], 4294966784  ;;  %vm50_vm0 = vcmask 261120   ;;  %v1473_v0 = vmov 0.0   ;;  %p1117_p2 = scmp.le.s32.totalorder %s1716_s0, 0 }
  0x27   :  { %51 = vst.msk [vmem:[#allocation2] sm:$0xff] %vm50_vm0, %v1473_v0  ;;  %52 = vst.msk [vmem:[#allocation3] sm:$0xff] %vm50_vm0, %v1473_v0  ;;  %v58_v1 = vld [vmem:[#allocation9] sm:$0xff] (!%p1117_p2)  ;;  %v59_v2 = vld [vmem:[#allocation9 + $0x8] sm:$0xff] (!%p1117_p2)  ;;  %v1474_v4 = vmov (!%p1117_p2), 0.0|0.0   ;;  %vm1475_vm1 = vmmov (!%p1117_p2), 0  }
  0x28   :  { %57 = sbr.rel (%p1117_p2) target bundleno = 5730 (0x1662), region = 29  ;;  %v60_v3 = vld [vmem:[#allocation9 + $0x10] sm:$0xff] (!%p1117_p2)  ;;  %1270 = vmatprep.subr.bf16.mxu0 (!%p1117_p2), %v1474_v4  ;;  %v1537_v5 = vpack.c.bf16 (!%p1117_p2), %v59_v2, %v58_v1  ;;  %v61_v6 = vld [vmem:[#allocation9 + $0x18] sm:$0xff] (!%p1117_p2)  ;;  %v1476_v7 = vmov (!%p1117_p2), 0.0   ;;  %1276 = vmatprep.subr.bf16.mxu1 (!%p1117_p2), %v1474_v4  ;;  %v65_v10 = vld [vmem:[#allocation6] sm:$0xff] (!%p1117_p2)  ;;  %v1477_v14 = vmov (!%p1117_p2), 0  }
  0x29   :  { %1190 = vmatprep.mubr.msk.f32.mxu0 (!%p1117_p2), %vm1475_vm1, %v1476_v7  ;;  %1201 = vmatprep.mubr.msk.f32.mxu1 (!%p1117_p2), %vm1475_vm1, %v1476_v7  ;;  %v1545_v8 = vpack.c.bf16 (!%p1117_p2), %v61_v6, %v60_v3  ;;  %s1478_s0 = smov (!%p1117_p2), 64   ;;  %s1479_s2 = smov (!%p1117_p2), 32   ;;  %v1568_v20 = vld [vmem:[%s1719_s3] sm:$0xff] (!%p1117_p2)  ;;  %v195_v41 = vld [vmem:[#allocation6 + $0x8] sm:$0xff] (!%p1117_p2) }
  0x2a   :  { %1272 = vmatpush3.bf16.msra.mxu0 (!%p1117_p2), %v1537_v5  ;;  %1278 = vmatpush3.bf16.msra.mxu1 (!%p1117_p2), %v1537_v5  ;;  %vm1120_vm2 = vcmp.gt.s32.totalorder (!%p1117_p2), %v1568_v20, 0  ;;  %s1480_s18 = smov (!%p1117_p2), 96   ;;  %vm1123_vm4 = vcmp.gt.s32.totalorder (!%p1117_p2), %v1568_v20, 1  ;;  %vm1126_vm6 = vcmp.gt.s32.totalorder (!%p1117_p2), %v1568_v20, 2  ;;  %v324_v6 = vld [vmem:[#allocation6 + $0x10] sm:$0xff] (!%p1117_p2)  ;;  %vm1129_vm8 = vcmp.gt.s32.totalorder (!%p1117_p2), %v1568_v20, 3 }
  0x2b   :  { %1273 = vmatprep.subr.bf16.mxu0 (!%p1117_p2), %v1474_v4  ;;  %1279 = vmatprep.subr.bf16.mxu1 (!%p1117_p2), %v1474_v4  ;;  %v171_v24 = vsel (!%p1117_p2), %vm1120_vm2, 1, %v1477_v14  ;;  %v300_v38 = vsel (!%p1117_p2), %vm1123_vm4, 1, %v1477_v14  ;;  %v429_v63 = vsel (!%p1117_p2), %vm1126_vm6, 1, %v1477_v14  ;;  %vm1132_vm10 = vcmp.gt.s32.totalorder (!%p1117_p2), %v1568_v20, 4 }
  0x2c   :  { %1331 = vset.pattern.permute.xlu1 (!%p1117_p2), %v1477_v14  ;;  %1332 = vset.pattern.permute.xlu0 (!%p1117_p2), %v1477_v14  ;;  %vm1135_vm12 = vcmp.gt.s32.totalorder (!%p1117_p2), %v1568_v20, 5  ;;  %vm1138_vm14 = vcmp.gt.s32.totalorder (!%p1117_p2), %v1568_v20, 6 }
  0x2e   :  { %1275 = vmatpush3.bf16.msra.mxu0 (!%p1117_p2), %v1545_v8  ;;  %v63_v9 = vld [vmem:[#allocation2] sm:$0xff] (!%p1117_p2)  ;;  %1281 = vmatpush3.bf16.msra.mxu1 (!%p1117_p2), %v1545_v8  ;;  %v64_v16 = vld [vmem:[#allocation3] sm:$0xff] (!%p1117_p2) }
  0x2f   :  { %1282 = vmatprep.subr.bf16.mxu0 %v1474_v4  ;;  %1288 = vmatprep.subr.bf16.mxu1 %v1474_v4 }
  0x31   :  { %1191 = vmatmul.mubr.msk.f32.vlgmr.msra.gmra.mrb[0].mxu0 %vm50_vm0, %v63_v9 }
  0x32   :  { %1284 = vmatpush3.bf16.msra.mxu0 %v1537_v5  ;;  %1212 = vmatprep.mubr.msk.f32.mxu0 %vm1475_vm1, %v1476_v7 }
  0x33   :  { %1285 = vmatprep.subr.bf16.mxu0 %v1474_v4 }
  0x36   :  { %1287 = vmatpush3.bf16.msra.mxu0 %v1545_v8 }
  0x37   :  { %1294 = vmatprep.subr.bf16.mxu0 %v1474_v4 }
 0x104   :  { %v136_v11 = vpop.f32.mrb[0].mxu0 }
 0x105   :  { %v140_v12 = vadd.f32 %v136_v11, %v65_v10  ;;  %v1192_v13 = vpop.f32.mrb[1].mxu0 }
 0x107   :  { %1333 = vtanh.f32 %v140_v12  ;;  %v1119_v17 = vmul.f32 -1.442695, %v140_v12 }
 0x109   :  { %1335 = vpow2.f32 %v1119_v17 }
 0x111   :  { %v1334_v15 = vpop.eup %1333 }
 0x112   :  { %154 = vrot.lane.b32.xlu0 %v1334_v15, %s1478_s0 }
 0x113   :  { %v1336_v18 = vpop.eup %1335 }
 0x114   :  { %v144_v19 = vadd.f32 1.0, %v1336_v18 }
 0x116   :  { %149 = vrot.lane.b32.xlu0 %v64_v16, %s1479_s2  ;;  %1337 = vrcp.f32 %v144_v19 }
 0x120   :  { %v1338_v21 = vpop.eup %1337 }
 0x184   :  { %v155_v22 = vpop.permute.xlu0 %154 }
 0x185   :  { %v157_v23 = vmul.f32 %v1338_v21, %v155_v22 }
 0x187   :  { %159 = vrot.lane.b32.xlu1 %v157_v23, %s1479_s2 }
 0x188   :  { %v150_v25 = vpop.permute.xlu0 %149 }
 0x189   :  { %v152_v26 = vmul.f32 %v1338_v21, %v150_v25 }
 0x18b   :  { %173 = vperm.xlu1 %1331, %v171_v24  }
 0x18f   :  { %176 = vrot.lane.b32.xlu1 %v63_v9, %s1480_s18 }
 0x1f9   :  { %v160_v27 = vpop.permute.xlu1 %159 }
 0x1fa   :  { %v162_v28 = vadd.f32 %v160_v27, %v152_v26 }
 0x1fc   :  { %1339 = vtanh.f32 %v162_v28 }
 0x206   :  { %v1340_v29 = vpop.eup %1339 }
 0x207   :  { %165 = vrot.lane.b32.xlu0 %v1340_v29, %s1478_s0 }
 0x20a   :  { %v174_v30 = vpop.permute.xlu1 %173 }
 0x20b   :  { %vm175_vm3 = vcmp.eq.s32.totalorder %v174_v30, 1 }
 0x20c   :  { %v185_v31 = vsel %vm175_vm3, %v162_v28, %v150_v25 }
 0x20d   :  { %187 = vrot.lane.b32.xlu1 %v185_v31, %s1480_s18 }
 0x20e   :  { %v177_v33 = vpop.permute.xlu1 %176 }
 0x279   :  { %v166_v32 = vpop.permute.xlu0 %165 }
 0x27a   :  { %v168_v34 = vmul.f32 %v1338_v21, %v166_v32  ;;  %v558_v32 = vsel %vm1129_vm8, 1, %v1477_v14 }
 0x27c   :  { %v179_v35 = vsel %vm175_vm3, %v168_v34, %v177_v33 }
 0x27d   :  { %181 = vrot.lane.b32.xlu0 %v179_v35, %s1479_s2 }
 0x27f   :  { %v188_v36 = vpop.permute.xlu1 %187 }
 0x280   :  { %190 = vst.msk [vmem:[#allocation3] sm:$0xff] %vm50_vm0, %v188_v36 }
 0x287   :  { %v193_v37 = vld [vmem:[#allocation3] sm:$0xff] }
 0x288   :  { %278 = vrot.lane.b32.xlu1 %v193_v37, %s1479_s2  ;;  %v453_v37 = vld [vmem:[#allocation6 + $0x18] sm:$0xff] }
 0x28c   :  { %302 = vperm.xlu1 %1331, %v300_v38  }
 0x2ef   :  { %v182_v39 = vpop.permute.xlu0 %181 }
 0x2f0   :  { %184 = vst.msk [vmem:[#allocation2] sm:$0xff] %vm50_vm0, %v182_v39 }
 0x2f7   :  { %v192_v40 = vld [vmem:[#allocation2] sm:$0xff] }
 0x2f8   :  { %305 = vrot.lane.b32.xlu1 %v192_v40, %s1480_s18  ;;  %1202 = vmatmul.mubr.msk.f32.vlgmr.msra.gmra.mrb[0].mxu1 %vm50_vm0, %v192_v40 }
 0x2f9   :  { %1290 = vmatpush3.bf16.msra.mxu1 %v1537_v5  ;;  %1223 = vmatprep.mubr.msk.f32.mxu1 %vm1475_vm1, %v1476_v7 }
 0x2fa   :  { %1291 = vmatprep.subr.bf16.mxu1 %v1474_v4  ;;  %v279_v52 = vpop.permute.xlu1 %278 }
 0x2fd   :  { %1293 = vmatpush3.bf16.msra.mxu1 %v1545_v8 }
 0x2fe   :  { %1300 = vmatprep.subr.bf16.mxu1 %v1474_v4 }
 0x30b   :  { %v303_v53 = vpop.permute.xlu1 %302 }
 0x30c   :  { %vm304_vm5 = vcmp.eq.s32.totalorder %v303_v53, 1 }
 0x36a   :  { %v306_v59 = vpop.permute.xlu1 %305 }
 0x3cb   :  { %v265_v42 = vpop.f32.mrb[0].mxu1 }
 0x3cc   :  { %v269_v43 = vadd.f32 %v265_v42, %v195_v41  ;;  %v1203_v44 = vpop.f32.mrb[1].mxu1 }
 0x3ce   :  { %1341 = vtanh.f32 %v269_v43  ;;  %v1122_v46 = vmul.f32 -1.442695, %v269_v43 }
 0x3d0   :  { %1343 = vpow2.f32 %v1122_v46 }
 0x3d8   :  { %v1342_v45 = vpop.eup %1341 }
 0x3d9   :  { %283 = vrot.lane.b32.xlu0 %v1342_v45, %s1478_s0 }
 0x3da   :  { %v1344_v47 = vpop.eup %1343 }
 0x3db   :  { %v273_v48 = vadd.f32 1.0, %v1344_v47 }
 0x3dd   :  { %1345 = vrcp.f32 %v273_v48 }
 0x3e7   :  { %v1346_v49 = vpop.eup %1345 }
 0x3e8   :  { %v281_v54 = vmul.f32 %v1346_v49, %v279_v52 }
 0x44b   :  { %v284_v50 = vpop.permute.xlu0 %283 }
 0x44c   :  { %v286_v51 = vmul.f32 %v1346_v49, %v284_v50 }
 0x44e   :  { %288 = vrot.lane.b32.xlu0 %v286_v51, %s1479_s2 }
 0x4c0   :  { %v289_v55 = vpop.permute.xlu0 %288 }
 0x4c1   :  { %v291_v56 = vadd.f32 %v289_v55, %v281_v54 }
 0x4c3   :  { %1347 = vtanh.f32 %v291_v56  ;;  %v314_v57 = vsel %vm304_vm5, %v291_v56, %v279_v52 }
 0x4c4   :  { %316 = vrot.lane.b32.xlu1 %v314_v57, %s1480_s18 }
 0x4cd   :  { %v1348_v58 = vpop.eup %1347 }
 0x4ce   :  { %294 = vrot.lane.b32.xlu0 %v1348_v58, %s1478_s0 }
 0x536   :  { %v317_v60 = vpop.permute.xlu1 %316 }
 0x537   :  { %319 = vst.msk [vmem:[#allocation3] sm:$0xff] %vm50_vm0, %v317_v60 }
 0x53e   :  { %v322_v61 = vld [vmem:[#allocation3] sm:$0xff] }
 0x53f   :  { %407 = vrot.lane.b32.xlu1 %v322_v61, %s1479_s2 }
 0x540   :  { %v295_v62 = vpop.permute.xlu0 %294 }
 0x541   :  { %v297_v0 = vmul.f32 %v1346_v49, %v295_v62 }
 0x543   :  { %431 = vperm.xlu1 %1331, %v429_v63   ;;  %v308_v1 = vsel %vm304_vm5, %v297_v0, %v306_v59  ;;  %v687_v59 = vsel %vm1132_vm10, 1, %v1477_v14  ;;  %v582_v0 = vld [vmem:[#allocation6 + $0x20] sm:$0xff] }
 0x544   :  { %310 = vrot.lane.b32.xlu0 %v308_v1, %s1479_s2 }
 0x5b1   :  { %v408_v21 = vpop.permute.xlu1 %407 }
 0x5b6   :  { %v311_v2 = vpop.permute.xlu0 %310 }
 0x5b7   :  { %313 = vst.msk [vmem:[#allocation2] sm:$0xff] %vm50_vm0, %v311_v2 }
 0x5be   :  { %v321_v3 = vld [vmem:[#allocation2] sm:$0xff] }
 0x5bf   :  { %434 = vrot.lane.b32.xlu1 %v321_v3, %s1480_s18  ;;  %1213 = vmatmul.mubr.msk.f32.vlgmr.msra.gmra.mrb[2].mxu0 %vm50_vm0, %v321_v3 }
 0x5c0   :  { %1296 = vmatpush3.bf16.msra.mxu0 %v1537_v5  ;;  %1234 = vmatprep.mubr.msk.f32.mxu0 %vm1475_vm1, %v1476_v7 }
 0x5c1   :  { %1297 = vmatprep.subr.bf16.mxu0 %v1474_v4 }
 0x5c2   :  { %v432_v22 = vpop.permute.xlu1 %431 }
 0x5c3   :  { %vm433_vm7 = vcmp.eq.s32.totalorder %v432_v22, 1 }
 0x5c4   :  { %1299 = vmatpush3.bf16.msra.mxu0 %v1545_v8 }
 0x5c5   :  { %1306 = vmatprep.subr.bf16.mxu0 %v1474_v4 }
 0x631   :  { %v435_v28 = vpop.permute.xlu1 %434 }
 0x692   :  { %v394_v9 = vpop.f32.mrb[2].mxu0 }
 0x693   :  { %v398_v10 = vadd.f32 %v394_v9, %v324_v6  ;;  %v1214_v11 = vpop.f32.mrb[3].mxu0 }
 0x695   :  { %1349 = vtanh.f32 %v398_v10  ;;  %v1125_v13 = vmul.f32 -1.442695, %v398_v10 }
 0x697   :  { %1351 = vpow2.f32 %v1125_v13 }
 0x69f   :  { %v1350_v12 = vpop.eup %1349 }
 0x6a0   :  { %412 = vrot.lane.b32.xlu0 %v1350_v12, %s1478_s0 }
 0x6a1   :  { %v1352_v15 = vpop.eup %1351 }
 0x6a2   :  { %v402_v16 = vadd.f32 1.0, %v1352_v15 }
 0x6a4   :  { %1353 = vrcp.f32 %v402_v16 }
 0x6ae   :  { %v1354_v17 = vpop.eup %1353 }
 0x6af   :  { %v410_v23 = vmul.f32 %v1354_v17, %v408_v21 }
 0x712   :  { %v413_v18 = vpop.permute.xlu0 %412 }
 0x713   :  { %v415_v19 = vmul.f32 %v1354_v17, %v413_v18 }
 0x715   :  { %417 = vrot.lane.b32.xlu0 %v415_v19, %s1479_s2 }
 0x787   :  { %v418_v24 = vpop.permute.xlu0 %417 }
 0x788   :  { %v420_v25 = vadd.f32 %v418_v24, %v410_v23 }
 0x78a   :  { %1355 = vtanh.f32 %v420_v25  ;;  %v443_v26 = vsel %vm433_vm7, %v420_v25, %v408_v21 }
 0x78b   :  { %445 = vrot.lane.b32.xlu1 %v443_v26, %s1480_s18 }
 0x794   :  { %v1356_v27 = vpop.eup %1355 }
 0x795   :  { %423 = vrot.lane.b32.xlu0 %v1356_v27, %s1478_s0 }
 0x7fd   :  { %v446_v29 = vpop.permute.xlu1 %445 }
 0x7fe   :  { %448 = vst.msk [vmem:[#allocation3] sm:$0xff] %vm50_vm0, %v446_v29 }
 0x805   :  { %v451_v30 = vld [vmem:[#allocation3] sm:$0xff] }
 0x806   :  { %536 = vrot.lane.b32.xlu1 %v451_v30, %s1479_s2 }
 0x807   :  { %v424_v31 = vpop.permute.xlu0 %423 }
 0x808   :  { %v426_v33 = vmul.f32 %v1354_v17, %v424_v31 }
 0x80a   :  { %560 = vperm.xlu1 %1331, %v558_v32   ;;  %v437_v34 = vsel %vm433_vm7, %v426_v33, %v435_v28  ;;  %v816_v28 = vsel %vm1135_vm12, 1, %v1477_v14  ;;  %v711_v33 = vld [vmem:[#allocation6 + $0x28] sm:$0xff] }
 0x80b   :  { %439 = vrot.lane.b32.xlu0 %v437_v34, %s1479_s2 }
 0x878   :  { %v537_v48 = vpop.permute.xlu1 %536 }
 0x87d   :  { %v440_v35 = vpop.permute.xlu0 %439 }
 0x87e   :  { %442 = vst.msk [vmem:[#allocation2] sm:$0xff] %vm50_vm0, %v440_v35 }
 0x885   :  { %v450_v36 = vld [vmem:[#allocation2] sm:$0xff] }
 0x886   :  { %563 = vrot.lane.b32.xlu1 %v450_v36, %s1480_s18  ;;  %1224 = vmatmul.mubr.msk.f32.vlgmr.msra.gmra.mrb[2].mxu1 %vm50_vm0, %v450_v36 }
 0x887   :  { %1302 = vmatpush3.bf16.msra.mxu1 %v1537_v5  ;;  %1245 = vmatprep.mubr.msk.f32.mxu1 %vm1475_vm1, %v1476_v7 }
 0x888   :  { %1303 = vmatprep.subr.bf16.mxu1 %v1474_v4 }
 0x889   :  { %v561_v49 = vpop.permute.xlu1 %560 }
 0x88a   :  { %vm562_vm9 = vcmp.eq.s32.totalorder %v561_v49, 1 }
 0x88b   :  { %1305 = vmatpush3.bf16.msra.mxu1 %v1545_v8 }
 0x88c   :  { %1312 = vmatprep.subr.bf16.mxu1 %v1474_v4 }
 0x8f8   :  { %v564_v55 = vpop.permute.xlu1 %563 }
 0x959   :  { %v523_v38 = vpop.f32.mrb[2].mxu1 }
 0x95a   :  { %v527_v39 = vadd.f32 %v523_v38, %v453_v37  ;;  %v1225_v40 = vpop.f32.mrb[3].mxu1 }
 0x95c   :  { %1357 = vtanh.f32 %v527_v39  ;;  %v1128_v42 = vmul.f32 -1.442695, %v527_v39 }
 0x95e   :  { %1359 = vpow2.f32 %v1128_v42 }
 0x966   :  { %v1358_v41 = vpop.eup %1357 }
 0x967   :  { %541 = vrot.lane.b32.xlu0 %v1358_v41, %s1478_s0 }
 0x968   :  { %v1360_v43 = vpop.eup %1359 }
 0x969   :  { %v531_v44 = vadd.f32 1.0, %v1360_v43 }
 0x96b   :  { %1361 = vrcp.f32 %v531_v44 }
 0x975   :  { %v1362_v45 = vpop.eup %1361 }
 0x976   :  { %v539_v50 = vmul.f32 %v1362_v45, %v537_v48 }
 0x9d9   :  { %v542_v46 = vpop.permute.xlu0 %541 }
 0x9da   :  { %v544_v47 = vmul.f32 %v1362_v45, %v542_v46 }
 0x9dc   :  { %546 = vrot.lane.b32.xlu0 %v544_v47, %s1479_s2 }
 0xa4e   :  { %v547_v51 = vpop.permute.xlu0 %546 }
 0xa4f   :  { %v549_v52 = vadd.f32 %v547_v51, %v539_v50  ;;  %v945_v51 = vsel %vm1138_vm14, 1, %v1477_v14 }
 0xa51   :  { %1363 = vtanh.f32 %v549_v52  ;;  %v572_v53 = vsel %vm562_vm9, %v549_v52, %v537_v48 }
 0xa52   :  { %574 = vrot.lane.b32.xlu1 %v572_v53, %s1480_s18 }
 0xa5b   :  { %v1364_v54 = vpop.eup %1363 }
 0xa5c   :  { %552 = vrot.lane.b32.xlu0 %v1364_v54, %s1478_s0 }
 0xac4   :  { %v575_v56 = vpop.permute.xlu1 %574 }
 0xac5   :  { %577 = vst.msk [vmem:[#allocation3] sm:$0xff] %vm50_vm0, %v575_v56  ;;  %v840_v56 = vld [vmem:[#allocation6 + $0x30] sm:$0xff] }
 0xacc   :  { %v580_v57 = vld [vmem:[#allocation3] sm:$0xff] }
 0xacd   :  { %665 = vrot.lane.b32.xlu1 %v580_v57, %s1479_s2 }
 0xace   :  { %v553_v58 = vpop.permute.xlu0 %552 }
 0xacf   :  { %v555_v60 = vmul.f32 %v1362_v45, %v553_v58 }
 0xad1   :  { %689 = vperm.xlu1 %1331, %v687_v59   ;;  %v566_v61 = vsel %vm562_vm9, %v555_v60, %v564_v55 }
 0xad2   :  { %568 = vrot.lane.b32.xlu0 %v566_v61, %s1479_s2 }
 0xb3f   :  { %v666_v16 = vpop.permute.xlu1 %665 }
 0xb44   :  { %v569_v62 = vpop.permute.xlu0 %568 }
 0xb45   :  { %571 = vst.msk [vmem:[#allocation2] sm:$0xff] %vm50_vm0, %v569_v62 }
 0xb4c   :  { %v579_v63 = vld [vmem:[#allocation2] sm:$0xff] }
 0xb4d   :  { %692 = vrot.lane.b32.xlu1 %v579_v63, %s1480_s18  ;;  %1235 = vmatmul.mubr.msk.f32.vlgmr.msra.gmra.mrb[4].mxu0 %vm50_vm0, %v579_v63 }
 0xb4e   :  { %1308 = vmatpush3.bf16.msra.mxu0 %v1537_v5  ;;  %1256 = vmatprep.mubr.msk.f32.mxu0 %vm1475_vm1, %v1476_v7 }
 0xb4f   :  { %1309 = vmatprep.subr.bf16.mxu0 %v1474_v4 }
 0xb50   :  { %v690_v17 = vpop.permute.xlu1 %689 }
 0xb51   :  { %vm691_vm11 = vcmp.eq.s32.totalorder %v690_v17, 1 }
 0xb52   :  { %1311 = vmatpush3.bf16.msra.mxu0 %v1545_v8 }
 0xbbf   :  { %v693_v24 = vpop.permute.xlu1 %692 }
 0xc20   :  { %v652_v1 = vpop.f32.mrb[4].mxu0 }
 0xc21   :  { %v656_v2 = vadd.f32 %v652_v1, %v582_v0  ;;  %v1236_v3 = vpop.f32.mrb[5].mxu0 }
 0xc23   :  { %1365 = vtanh.f32 %v656_v2  ;;  %v1131_v9 = vmul.f32 -1.442695, %v656_v2 }
 0xc25   :  { %1367 = vpow2.f32 %v1131_v9 }
 0xc2d   :  { %v1366_v6 = vpop.eup %1365 }
 0xc2e   :  { %670 = vrot.lane.b32.xlu0 %v1366_v6, %s1478_s0 }
 0xc2f   :  { %v1368_v10 = vpop.eup %1367 }
 0xc30   :  { %v660_v11 = vadd.f32 1.0, %v1368_v10 }
 0xc32   :  { %1369 = vrcp.f32 %v660_v11 }
 0xc3c   :  { %v1370_v12 = vpop.eup %1369 }
 0xc3d   :  { %v668_v18 = vmul.f32 %v1370_v12, %v666_v16 }
 0xca0   :  { %v671_v13 = vpop.permute.xlu0 %670 }
 0xca1   :  { %v673_v15 = vmul.f32 %v1370_v12, %v671_v13 }
 0xca3   :  { %675 = vrot.lane.b32.xlu0 %v673_v15, %s1479_s2 }
 0xd15   :  { %v676_v19 = vpop.permute.xlu0 %675 }
 0xd16   :  { %v678_v21 = vadd.f32 %v676_v19, %v668_v18 }
 0xd18   :  { %1371 = vtanh.f32 %v678_v21  ;;  %v701_v22 = vsel %vm691_vm11, %v678_v21, %v666_v16 }
 0xd19   :  { %703 = vrot.lane.b32.xlu1 %v701_v22, %s1480_s18 }
 0xd22   :  { %v1372_v23 = vpop.eup %1371 }
 0xd23   :  { %681 = vrot.lane.b32.xlu0 %v1372_v23, %s1478_s0 }
 0xd8b   :  { %v704_v25 = vpop.permute.xlu1 %703 }
 0xd8c   :  { %706 = vst.msk [vmem:[#allocation3] sm:$0xff] %vm50_vm0, %v704_v25 }
 0xd93   :  { %v709_v26 = vld [vmem:[#allocation3] sm:$0xff] }
 0xd94   :  { %794 = vrot.lane.b32.xlu1 %v709_v26, %s1479_s2 }
 0xd95   :  { %v682_v27 = vpop.permute.xlu0 %681 }
 0xd96   :  { %v684_v29 = vmul.f32 %v1370_v12, %v682_v27 }
 0xd98   :  { %818 = vperm.xlu1 %1331, %v816_v28   ;;  %v695_v30 = vsel %vm691_vm11, %v684_v29, %v693_v24 }
 0xd99   :  { %697 = vrot.lane.b32.xlu0 %v695_v30, %s1479_s2 }
 0xe0b   :  { %v698_v31 = vpop.permute.xlu0 %697 }
 0xe0c   :  { %700 = vst.msk [vmem:[#allocation2] sm:$0xff] %vm50_vm0, %v698_v31 }
 0xe13   :  { %v708_v32 = vld [vmem:[#allocation2] sm:$0xff] }
 0xe14   :  { %821 = vrot.lane.b32.xlu1 %v708_v32, %s1480_s18  ;;  %1246 = vmatmul.mubr.msk.f32.vlgmr.msra.gmra.mrb[4].mxu1 %vm50_vm0, %v708_v32 }
 0xe15   :  { %1314 = vmatpush3.bf16.msra.mxu1 %v1537_v5  ;;  %1267 = vmatprep.mubr.msk.f32.mxu1 %vm1475_vm1, %v1476_v7  ;;  %vm1141_vm1 = vcmp.gt.s32.totalorder %v1568_v20, 7  ;;  %v969_v20 = vld [vmem:[#allocation6 + $0x38] sm:$0xff] }
 0xe16   :  { %1315 = vmatprep.subr.bf16.mxu1 %v1474_v4  ;;  %v795_v4 = vpop.permute.xlu1 %794  ;;  %v1074_v19 = vsel %vm1141_vm1, 1, %v1477_v14 }
 0xe19   :  { %1317 = vmatpush3.bf16.msra.mxu1 %v1545_v8 }
 0xe1a   :  { %v819_v8 = vpop.permute.xlu1 %818 }
 0xe1b   :  { %vm820_vm13 = vcmp.eq.s32.totalorder %v819_v8, 1 }
 0xe86   :  { %v822_v47 = vpop.permute.xlu1 %821 }
 0xee7   :  { %v781_v34 = vpop.f32.mrb[4].mxu1 }
 0xee8   :  { %v785_v35 = vadd.f32 %v781_v34, %v711_v33  ;;  %v1247_v36 = vpop.f32.mrb[5].mxu1 }
 0xeea   :  { %1373 = vtanh.f32 %v785_v35  ;;  %v1134_v38 = vmul.f32 -1.442695, %v785_v35 }
 0xeec   :  { %1375 = vpow2.f32 %v1134_v38 }
 0xef4   :  { %v1374_v37 = vpop.eup %1373 }
 0xef5   :  { %799 = vrot.lane.b32.xlu0 %v1374_v37, %s1478_s0 }
 0xef6   :  { %v1376_v39 = vpop.eup %1375 }
 0xef7   :  { %v789_v40 = vadd.f32 1.0, %v1376_v39 }
 0xef9   :  { %1377 = vrcp.f32 %v789_v40 }
 0xf03   :  { %v1378_v5 = vpop.eup %1377 }
 0xf04   :  { %v797_v42 = vmul.f32 %v1378_v5, %v795_v4 }
 0xf67   :  { %v800_v41 = vpop.permute.xlu0 %799 }
 0xf68   :  { %v802_v7 = vmul.f32 %v1378_v5, %v800_v41 }
 0xf6a   :  { %804 = vrot.lane.b32.xlu0 %v802_v7, %s1479_s2 }
 0xfdc   :  { %v805_v43 = vpop.permute.xlu0 %804 }
 0xfdd   :  { %v807_v44 = vadd.f32 %v805_v43, %v797_v42 }
 0xfdf   :  { %1379 = vtanh.f32 %v807_v44  ;;  %v830_v45 = vsel %vm820_vm13, %v807_v44, %v795_v4 }
 0xfe0   :  { %832 = vrot.lane.b32.xlu1 %v830_v45, %s1480_s18 }
 0xfe9   :  { %v1380_v46 = vpop.eup %1379 }
 0xfea   :  { %810 = vrot.lane.b32.xlu0 %v1380_v46, %s1478_s0 }
0x1052   :  { %v833_v48 = vpop.permute.xlu1 %832 }
0x1053   :  { %835 = vst.msk [vmem:[#allocation3] sm:$0xff] %vm50_vm0, %v833_v48 }
0x105a   :  { %v838_v49 = vld [vmem:[#allocation3] sm:$0xff] }
0x105b   :  { %923 = vrot.lane.b32.xlu1 %v838_v49, %s1479_s2 }
0x105c   :  { %v811_v50 = vpop.permute.xlu0 %810 }
0x105d   :  { %v813_v52 = vmul.f32 %v1378_v5, %v811_v50 }
0x105f   :  { %947 = vperm.xlu1 %1331, %v945_v51   ;;  %v824_v53 = vsel %vm820_vm13, %v813_v52, %v822_v47 }
0x1060   :  { %826 = vrot.lane.b32.xlu0 %v824_v53, %s1479_s2 }
0x10cd   :  { %v924_v3 = vpop.permute.xlu1 %923 }
0x10d2   :  { %v827_v54 = vpop.permute.xlu0 %826 }
0x10d3   :  { %829 = vst.msk [vmem:[#allocation2] sm:$0xff] %vm50_vm0, %v827_v54 }
0x10da   :  { %v837_v55 = vld [vmem:[#allocation2] sm:$0xff] }
0x10db   :  { %950 = vrot.lane.b32.xlu1 %v837_v55, %s1480_s18  ;;  %1257 = vmatmul.mubr.msk.f32.vlgmr.msra.gmra.mrb[6].mxu0 %vm50_vm0, %v837_v55 }
0x10de   :  { %v948_v6 = vpop.permute.xlu1 %947 }
0x10df   :  { %vm949_vm15 = vcmp.eq.s32.totalorder %v948_v6, 1 }
0x114d   :  { %v951_v15 = vpop.permute.xlu1 %950 }
0x11ae   :  { %v910_v57 = vpop.f32.mrb[6].mxu0 }
0x11af   :  { %v914_v58 = vadd.f32 %v910_v57, %v840_v56  ;;  %v1258_v59 = vpop.f32.mrb[7].mxu0 }
0x11b1   :  { %1381 = vtanh.f32 %v914_v58  ;;  %v1137_v61 = vmul.f32 -1.442695, %v914_v58 }
0x11b3   :  { %1383 = vpow2.f32 %v1137_v61 }
0x11bb   :  { %v1382_v60 = vpop.eup %1381 }
0x11bc   :  { %928 = vrot.lane.b32.xlu0 %v1382_v60, %s1478_s0 }
0x11bd   :  { %v1384_v62 = vpop.eup %1383 }
0x11be   :  { %v918_v63 = vadd.f32 1.0, %v1384_v62 }
0x11c0   :  { %1385 = vrcp.f32 %v918_v63 }
0x11ca   :  { %v1386_v0 = vpop.eup %1385 }
0x11cb   :  { %v926_v9 = vmul.f32 %v1386_v0, %v924_v3 }
0x122e   :  { %v929_v1 = vpop.permute.xlu0 %928 }
0x122f   :  { %v931_v2 = vmul.f32 %v1386_v0, %v929_v1 }
0x1231   :  { %933 = vrot.lane.b32.xlu0 %v931_v2, %s1479_s2 }
0x12a3   :  { %v934_v10 = vpop.permute.xlu0 %933 }
0x12a4   :  { %v936_v11 = vadd.f32 %v934_v10, %v926_v9 }
0x12a6   :  { %1387 = vtanh.f32 %v936_v11  ;;  %v959_v12 = vsel %vm949_vm15, %v936_v11, %v924_v3 }
0x12a7   :  { %961 = vrot.lane.b32.xlu1 %v959_v12, %s1480_s18 }
0x12b0   :  { %v1388_v13 = vpop.eup %1387 }
0x12b1   :  { %939 = vrot.lane.b32.xlu0 %v1388_v13, %s1478_s0 }
0x1319   :  { %v962_v16 = vpop.permute.xlu1 %961 }
0x131a   :  { %964 = vst.msk [vmem:[#allocation3] sm:$0xff] %vm50_vm0, %v962_v16 }
0x1321   :  { %v967_v17 = vld [vmem:[#allocation3] sm:$0xff] }
0x1322   :  { %1052 = vrot.lane.b32.xlu1 %v967_v17, %s1479_s2 }
0x1323   :  { %v940_v18 = vpop.permute.xlu0 %939 }
0x1324   :  { %v942_v21 = vmul.f32 %v1386_v0, %v940_v18 }
0x1326   :  { %1076 = vperm.xlu1 %1331, %v1074_v19   ;;  %v953_v22 = vsel %vm949_vm15, %v942_v21, %v951_v15 }
0x1327   :  { %955 = vrot.lane.b32.xlu0 %v953_v22, %s1479_s2 }
0x1394   :  { %v1053_v34 = vpop.permute.xlu1 %1052 }
0x1399   :  { %v956_v23 = vpop.permute.xlu0 %955 }
0x139a   :  { %958 = vst.msk [vmem:[#allocation2] sm:$0xff] %vm50_vm0, %v956_v23 }
0x13a1   :  { %v966_v24 = vld [vmem:[#allocation2] sm:$0xff] }
0x13a2   :  { %1079 = vrot.lane.b32.xlu1 %v966_v24, %s1480_s18  ;;  %1268 = vmatmul.mubr.msk.f32.vlgmr.msra.gmra.mrb[6].mxu1 %vm50_vm0, %v966_v24 }
0x13a5   :  { %v1077_v35 = vpop.permute.xlu1 %1076 }
0x13a6   :  { %vm1078_vm2 = vcmp.eq.s32.totalorder %v1077_v35, 1 }
0x1414   :  { %v1080_v5 = vpop.permute.xlu1 %1079 }
0x1475   :  { %v1039_v25 = vpop.f32.mrb[6].mxu1 }
0x1476   :  { %v1043_v26 = vadd.f32 %v1039_v25, %v969_v20  ;;  %v1269_v27 = vpop.f32.mrb[7].mxu1 }
0x1478   :  { %1389 = vtanh.f32 %v1043_v26  ;;  %v1140_v28 = vmul.f32 -1.442695, %v1043_v26 }
0x147a   :  { %1391 = vpow2.f32 %v1140_v28 }
0x1482   :  { %v1390_v14 = vpop.eup %1389 }
0x1483   :  { %1057 = vrot.lane.b32.xlu0 %v1390_v14, %s1478_s0 }
0x1484   :  { %v1392_v29 = vpop.eup %1391 }
0x1485   :  { %v1047_v30 = vadd.f32 1.0, %v1392_v29 }
0x1487   :  { %1393 = vrcp.f32 %v1047_v30 }
0x1491   :  { %v1394_v31 = vpop.eup %1393 }
0x1492   :  { %v1055_v36 = vmul.f32 %v1394_v31, %v1053_v34 }
0x14f5   :  { %v1058_v32 = vpop.permute.xlu0 %1057 }
0x14f6   :  { %v1060_v33 = vmul.f32 %v1394_v31, %v1058_v32 }
0x14f8   :  { %1062 = vrot.lane.b32.xlu0 %v1060_v33, %s1479_s2 }
0x156a   :  { %v1063_v37 = vpop.permute.xlu0 %1062 }
0x156b   :  { %v1065_v38 = vadd.f32 %v1063_v37, %v1055_v36 }
0x156d   :  { %1395 = vtanh.f32 %v1065_v38  ;;  %v1088_v39 = vsel %vm1078_vm2, %v1065_v38, %v1053_v34 }
0x156e   :  { %1090 = vrot.lane.b32.xlu1 %v1088_v39, %s1480_s18 }
0x1577   :  { %v1396_v40 = vpop.eup %1395 }
0x1578   :  { %1068 = vrot.lane.b32.xlu0 %v1396_v40, %s1478_s0 }
0x15e0   :  { %v1091_v41 = vpop.permute.xlu1 %1090 }
0x15e1   :  { %1093 = vst.msk [vmem:[#allocation3] sm:$0xff] %vm50_vm0, %v1091_v41 }
0x15ea   :  { %v1069_v7 = vpop.permute.xlu0 %1068 }
0x15eb   :  { %v1071_v4 = vmul.f32 %v1394_v31, %v1069_v7 }
0x15ed   :  { %v1082_v8 = vsel %vm1078_vm2, %v1071_v4, %v1080_v5 }
0x15ee   :  { %1084 = vrot.lane.b32.xlu0 %v1082_v8, %s1479_s2 }
0x1660   :  { %v1085_v42 = vpop.permute.xlu0 %1084 }
0x1661   :  { %1087 = vst.msk [vmem:[#allocation2] sm:$0xff] %vm50_vm0, %v1085_v42 }
0x1662 PF:  { %s1481_s3 = smov [#allocation11]  }
0x1663   :  { %s1106_s19 = sshll.u32 %s1481_s3, 4  ;;  %s1107_s19 = int_to_ptr.vmem [resolvable:$true] %s1106_s19 }
0x1664   :  { %s1441_s20 = scalar_lea.vmem %s1107_s19, 128  ;;  %p1446_p4 = scmp.lt.s32.totalorder %s1107_s19, %s1107_s19 }
0x1665   :  { %p1442_p3 = scmp.ne.s32.totalorder %s1107_s19, %s1441_s20  ;;  %p1447_p5 = scmp.lt.s32.totalorder %s1441_s20, %s1441_s20 }
0x1667   :  { %p1448_p6 = por %p1447_p5, %p1446_p4 }
0x1668   :  { %v1097_v43 = vld [vmem:[#allocation2] sm:$0xff] }
0x1669   :  { %1099 = vst.msk [vmem:[#allocation11] sm:$0xff] %vm50_vm0, %v1097_v43  ;;  %p1449_p7 = pnand %p1448_p6, %p1442_p3 }
0x166b   :  { %1452 = shalt.err (!%p1449_p7)
}
0x166c   :  { %s1453_s23 = scalar_lea.hbm %s1720_s4, 128 }
0x166d   :  { %p1454_p8 = scmp.ne.s32.totalorder %s1720_s4, %s1453_s23  ;;  %p1457_p9 = scmp.lt.u32.totalorder %s1453_s23, %s1720_s4 }
0x166f   :  { %p1459_p10 = pnand %p1457_p9, %p1454_p8 }
0x1671   :  { %1462 = shalt.err (!%p1459_p10)
}
0x1672   :  { %1109 = dma.vmem_to_hbm [thread:$0]  %s1107_s19, 128, %s1720_s4, [#allocation8]  }
0x1673   :  { %1467 = dma.done.wait [#allocation8], 128  }
0x1674   :  { %1468 = vsyncadd [#allocation8], 4294967168 }
0x1675   :  { %1113 = vsyncpa [#allocation7], 1 }
0x1676   :  { %1114 = vsyncpa [#allocation10], 1 }
0x1677   :  { %1115 = vsyncpa [#allocation8], 1 }

</bundles_post_ra>
